<compile_context>
chip_gen: v7x
topology: tpu7x:2x2x1
jax: 0.10.0
libtpu: 0.0.40
codegen_flags: <defaults>
</compile_context>

<pallas_src>
import functools
import math

import jax
import jax.numpy as jnp
from jax.experimental import pallas as pl
from jax.experimental.pallas import tpu as pltpu


# ----------------------------- fused Pallas kernel -----------------------------

def _fused_forward_kernel(x_ref, add_ref, wemb_ref, bemb_ref,
                          wqkv_ref, bqkv_ref, wo_ref, bo_ref,
                          w1_ref, b1_ref, w2_ref, b2_ref,
                          ln1g_ref, ln1b_ref, ln2g_ref, ln2b_ref,
                          lnfg_ref, lnfb_ref, wcls_ref,
                          o_ref, *, L, H, Dh, e_layers, pred_len, eps, activation):
    """One batch element: embed -> e_layers encoder layers -> LN -> classifier."""
    D = H * Dh
    f32 = jnp.float32
    bf16 = jnp.bfloat16

    def mm(a, b):
        # bf16 MXU operands, f32 accumulation.
        return jnp.dot(a.astype(bf16), b.astype(bf16), preferred_element_type=f32)

    def layernorm(x, g, b):
        mean = jnp.mean(x, axis=-1, keepdims=True)
        xc = x - mean
        var = jnp.mean(xc * xc, axis=-1, keepdims=True)
        return xc * jax.lax.rsqrt(var + eps) * g + b

    x = x_ref[0].astype(f32)          # (L, enc_in + mark_in)
    add = add_ref[0].astype(f32)      # (L, D)  = state embedding + positional

    # ---- embedding: fused value+temporal projection + additive term ----
    h = mm(x, wemb_ref[...]) + bemb_ref[...] + add          # (L, D), f32

    # ---- encoder layers ----
    for l in range(e_layers):
        # fused QKV projection (scale already folded into Wq at init)
        qkv = mm(h, wqkv_ref[l]) + bqkv_ref[l]               # (L, 3D)
        wo_l = wo_ref[l]                                     # (D, D) bf16

        proj = None
        for hh in range(H):
            q_h = qkv[:, hh * Dh:(hh + 1) * Dh]              # (L, Dh)
            k_h = qkv[:, D + hh * Dh: D + (hh + 1) * Dh]
            v_h = qkv[:, 2 * D + hh * Dh: 2 * D + (hh + 1) * Dh]

            # scores: contract head dim of Q with head dim of K (no transpose copy)
            s = jax.lax.dot_general(
                q_h.astype(bf16), k_h.astype(bf16),
                (((1,), (1,)), ((), ())),
                preferred_element_type=f32)                  # (L, L)
            m = jnp.max(s, axis=-1, keepdims=True)
            p = jnp.exp(s - m)
            p = p * pl.reciprocal(jnp.sum(p, axis=-1, keepdims=True), approx=True)

            o_h = mm(p, v_h)                                 # (L, Dh)
            # accumulate output projection per head -> no lane-axis concat
            contrib = mm(o_h, wo_l[hh * Dh:(hh + 1) * Dh, :])   # (L, D)
            proj = contrib if proj is None else proj + contrib

        # residual + LayerNorm (norm1)
        y = h + proj + bo_ref[l]
        h = layernorm(y, ln1g_ref[l], ln1b_ref[l])

        # FFN: (L, d_ff) intermediate never leaves VMEM
        t = mm(h, w1_ref[l]) + b1_ref[l]
        if activation == "relu":
            t = jnp.maximum(t, 0.0)
        else:
            # TODO(synk): PyTorch F.gelu default is exact erf; tanh approximation used.
            t = jax.nn.gelu(t, approximate=True)
        y2 = mm(t, w2_ref[l]) + b2_ref[l]
        h = layernorm(h + y2, ln2g_ref[l], ln2b_ref[l])

    # ---- output head: final LN on last pred_len rows + tied classifier matmul ----
    last = h[L - pred_len:, :]                               # (pred_len, D)
    xn = layernorm(last, lnfg_ref[...], lnfb_ref[...])
    logits = mm(xn, wcls_ref[...])                           # (pred_len, n_pad) lane-dense
    o_ref[0] = logits.astype(o_ref.dtype)


# ----------------------------- kernel wrapper -----------------------------

def informer_forward(params, x_in, add_term, *, n_heads, pred_len,
                     activation="gelu", eps=1e-5):
    B, L, _ = x_in.shape
    D = add_term.shape[-1]
    H = n_heads
    Dh = D // H
    e_layers = params["wqkv"].shape[0]
    n_pad = params["wcls"].shape[1]

    kernel = functools.partial(
        _fused_forward_kernel, L=L, H=H, Dh=Dh, e_layers=e_layers,
        pred_len=pred_len, eps=eps, activation=activation)

    def batch_spec(shape):
        nd = len(shape)
        return pl.BlockSpec((1,) + tuple(shape[1:]),
                            lambda b, _nd=nd: (b,) + (0,) * (_nd - 1))

    def full_spec(shape):
        nd = len(shape)
        return pl.BlockSpec(tuple(shape), lambda b, _nd=nd: (0,) * _nd)

    args = (x_in, add_term,
            params["w_emb"], params["b_emb"],
            params["wqkv"], params["bqkv"], params["wo"], params["bo"],
            params["w1"], params["b1"], params["w2"], params["b2"],
            params["ln1_g"], params["ln1_b"], params["ln2_g"], params["ln2_b"],
            params["ln_f_g"], params["ln_f_b"], params["wcls"])

    in_specs = [batch_spec(x_in.shape), batch_spec(add_term.shape)]
    in_specs += [full_spec(a.shape) for a in args[2:]]

    return pl.pallas_call(
        kernel,
        out_shape=jax.ShapeDtypeStruct((B, pred_len, n_pad), jnp.float32),
        grid=(B,),
        in_specs=in_specs,
        out_specs=pl.BlockSpec((1, pred_len, n_pad), lambda b: (b, 0, 0)),
        compiler_params=pltpu.CompilerParams(dimension_semantics=("parallel",)),
    )(*args)


# ------------------------------ Model (glue) ------------------------------

def sinusoidal_pos_emb(L, d_model):
    position = jnp.arange(L, dtype=jnp.float32)[:, None]
    div_term = jnp.exp(
        jnp.arange(0, d_model, 2, dtype=jnp.float32)
        * -(math.log(10000.0) / d_model))
    pe = jnp.zeros((L, d_model), dtype=jnp.float32)
    pe = pe.at[:, 0::2].set(jnp.sin(position * div_term))
    pe = pe.at[:, 1::2].set(jnp.cos(position * div_term))
    return pe


def init_params(key, *, num_grps, d_model, n_heads, d_ff, e_layers,
                enc_in, mark_in):
    """All per-forward weight prep (concat/scale-fold/transpose/pad) done here once."""
    def dense(k, fan_in, fan_out):
        return jax.random.normal(k, (fan_in, fan_out), jnp.float32) * 0.02

    keys = iter(jax.random.split(key, 3 + 6 * e_layers))

    state_emb = jax.random.normal(next(keys), (num_grps + 1, d_model),
                                  jnp.float32) * 0.02
    w_val = dense(next(keys), enc_in, d_model)
    w_mark = dense(next(keys), mark_in, d_model)

    head_dim = d_model // n_heads
    scale = 1.0 / math.sqrt(head_dim)

    wqkv, wo, w1, w2 = [], [], [], []
    for _ in range(e_layers):
        wq = dense(next(keys), d_model, d_model) * scale     # attention scale folded in
        wk = dense(next(keys), d_model, d_model)
        wv = dense(next(keys), d_model, d_model)
        wqkv.append(jnp.concatenate([wq, wk, wv], axis=1))   # fused (D, 3D)
        wo.append(dense(next(keys), d_model, d_model))
        w1.append(dense(next(keys), d_model, d_ff))
        w2.append(dense(next(keys), d_ff, d_model))

    # classifier tied to state embedding (transposed), zero-padded to 128 lanes
    n_cls = num_grps + 1
    n_pad = ((n_cls + 127) // 128) * 128
    wcls = jnp.zeros((d_model, n_pad), jnp.float32).at[:, :n_cls].set(state_emb.T)

    bf16 = jnp.bfloat16
    params = {
        "state_emb": state_emb,                                           # f32, for gather
        "w_emb": jnp.concatenate([w_val, w_mark], axis=0).astype(bf16),   # (enc+mark, D)
        "b_emb": jnp.zeros((1, d_model), jnp.float32),                    # b_val + b_mark
        "wqkv": jnp.stack(wqkv).astype(bf16),                             # (E, D, 3D)
        "bqkv": jnp.zeros((e_layers, 1, 3 * d_model), jnp.float32),
        "wo": jnp.stack(wo).astype(bf16),                                 # (E, D, D)
        "bo": jnp.zeros((e_layers, 1, d_model), jnp.float32),
        "w1": jnp.stack(w1).astype(bf16),                                 # (E, D, d_ff)
        "b1": jnp.zeros((e_layers, 1, d_ff), jnp.float32),
        "w2": jnp.stack(w2).astype(bf16),                                 # (E, d_ff, D)
        "b2": jnp.zeros((e_layers, 1, d_model), jnp.float32),
        "ln1_g": jnp.ones((e_layers, 1, d_model), jnp.float32),
        "ln1_b": jnp.zeros((e_layers, 1, d_model), jnp.float32),
        "ln2_g": jnp.ones((e_layers, 1, d_model), jnp.float32),
        "ln2_b": jnp.zeros((e_layers, 1, d_model), jnp.float32),
        "ln_f_g": jnp.ones((1, d_model), jnp.float32),
        "ln_f_b": jnp.zeros((1, d_model), jnp.float32),
        "wcls": wcls.astype(bf16),                                        # (D, n_pad)
    }
    return params


def model_forward(params, x_state_enc, x_enc, x_mark_enc, *, n_heads, pred_len=1):
    B, L = x_state_enc.shape
    d_model = params["state_emb"].shape[1]
    num_grps = params["state_emb"].shape[0] - 1

    # ---- StatePosEmbedding additive term (tiny gather + constant pos emb) ----
    state = jnp.take(params["state_emb"], x_state_enc, axis=0)        # (B, L, D)
    add_term = state + sinusoidal_pos_emb(L, d_model)[None]           # (B, L, D)

    # value + temporal features concatenated -> one fused embed matmul in-kernel
    x_in = jnp.concatenate([x_enc, x_mark_enc], axis=-1)              # (B, L, enc+mark)

    logits_full = informer_forward(params, x_in, add_term,
                                   n_heads=n_heads, pred_len=pred_len)
    # drop lane padding and the last class (reference does [:, :, :-1])
    return logits_full[:, :, :num_grps]


# --------------------------------- main ---------------------------------

if __name__ == "__main__":
    # small config consistent with the module
    num_grps = 4
    d_model = 32
    n_heads = 4
    d_ff = 64
    e_layers_markov = 2
    enc_in = 4
    mark_in = 4
    B, L = 2, 8

    key = jax.random.PRNGKey(0)
    k_par, k_st, k_x, k_m = jax.random.split(key, 4)

    params = init_params(k_par, num_grps=num_grps, d_model=d_model,
                         n_heads=n_heads, d_ff=d_ff, e_layers=e_layers_markov,
                         enc_in=enc_in, mark_in=mark_in)

    x_state_enc = jax.random.randint(k_st, (B, L), 0, num_grps + 1,
                                     dtype=jnp.int32)
    x_enc = jax.random.normal(k_x, (B, L, enc_in), jnp.float32)
    x_mark_enc = jax.random.normal(k_m, (B, L, mark_in), jnp.float32)

    fwd = jax.jit(functools.partial(model_forward, n_heads=n_heads))
    out = fwd(params, x_state_enc, x_enc, x_mark_enc)
    out = jax.block_until_ready(out)

    assert out.shape == (B, 1, num_grps), out.shape
    assert jnp.all(jnp.isfinite(out))
    print("KERNEL_OK")
</pallas_src>

<mosaic_0001>
module attributes {stable_mosaic.version = 11 : i64} {
  func.func @_fused_forward_kernel(%arg0: i32, %arg1: memref<1x8x8xf32, #tpu.memory_space<vmem>>, %arg2: memref<1x8x32xf32, #tpu.memory_space<vmem>>, %arg3: memref<8x32xbf16, #tpu.memory_space<vmem>>, %arg4: memref<1x32xf32, #tpu.memory_space<vmem>>, %arg5: memref<2x32x96xbf16, #tpu.memory_space<vmem>>, %arg6: memref<2x1x96xf32, #tpu.memory_space<vmem>>, %arg7: memref<2x32x32xbf16, #tpu.memory_space<vmem>>, %arg8: memref<2x1x32xf32, #tpu.memory_space<vmem>>, %arg9: memref<2x32x64xbf16, #tpu.memory_space<vmem>>, %arg10: memref<2x1x64xf32, #tpu.memory_space<vmem>>, %arg11: memref<2x64x32xbf16, #tpu.memory_space<vmem>>, %arg12: memref<2x1x32xf32, #tpu.memory_space<vmem>>, %arg13: memref<2x1x32xf32, #tpu.memory_space<vmem>>, %arg14: memref<2x1x32xf32, #tpu.memory_space<vmem>>, %arg15: memref<2x1x32xf32, #tpu.memory_space<vmem>>, %arg16: memref<2x1x32xf32, #tpu.memory_space<vmem>>, %arg17: memref<1x32xf32, #tpu.memory_space<vmem>>, %arg18: memref<1x32xf32, #tpu.memory_space<vmem>>, %arg19: memref<32x128xbf16, #tpu.memory_space<vmem>>, %arg20: memref<1x1x128xf32, #tpu.memory_space<vmem>>) attributes {dimension_semantics = [#tpu.dimension_semantics<parallel>], iteration_bounds = array<i64: 2>, scalar_prefetch = 0 : i64, scratch_operands = 0 : i64, tpu.core_type = #tpu.core_type<tc>, window_params = [{transform_indices = @transform_0, window_bounds = array<i64: 1, 8, 8>}, {transform_indices = @transform_1, window_bounds = array<i64: 1, 8, 32>}, {pipeline_mode = #tpu.pipeline_mode<synchronous>, transform_indices = @transform_2, window_bounds = array<i64: 8, 32>}, {pipeline_mode = #tpu.pipeline_mode<synchronous>, transform_indices = @transform_3, window_bounds = array<i64: 1, 32>}, {pipeline_mode = #tpu.pipeline_mode<synchronous>, transform_indices = @transform_4, window_bounds = array<i64: 2, 32, 96>}, {pipeline_mode = #tpu.pipeline_mode<synchronous>, transform_indices = @transform_5, window_bounds = array<i64: 2, 1, 96>}, {pipeline_mode = #tpu.pipeline_mode<synchronous>, transform_indices = @transform_6, window_bounds = array<i64: 2, 32, 32>}, {pipeline_mode = #tpu.pipeline_mode<synchronous>, transform_indices = @transform_7, window_bounds = array<i64: 2, 1, 32>}, {pipeline_mode = #tpu.pipeline_mode<synchronous>, transform_indices = @transform_8, window_bounds = array<i64: 2, 32, 64>}, {pipeline_mode = #tpu.pipeline_mode<synchronous>, transform_indices = @transform_9, window_bounds = array<i64: 2, 1, 64>}, {pipeline_mode = #tpu.pipeline_mode<synchronous>, transform_indices = @transform_10, window_bounds = array<i64: 2, 64, 32>}, {pipeline_mode = #tpu.pipeline_mode<synchronous>, transform_indices = @transform_11, window_bounds = array<i64: 2, 1, 32>}, {pipeline_mode = #tpu.pipeline_mode<synchronous>, transform_indices = @transform_12, window_bounds = array<i64: 2, 1, 32>}, {pipeline_mode = #tpu.pipeline_mode<synchronous>, transform_indices = @transform_13, window_bounds = array<i64: 2, 1, 32>}, {pipeline_mode = #tpu.pipeline_mode<synchronous>, transform_indices = @transform_14, window_bounds = array<i64: 2, 1, 32>}, {pipeline_mode = #tpu.pipeline_mode<synchronous>, transform_indices = @transform_15, window_bounds = array<i64: 2, 1, 32>}, {pipeline_mode = #tpu.pipeline_mode<synchronous>, transform_indices = @transform_16, window_bounds = array<i64: 1, 32>}, {pipeline_mode = #tpu.pipeline_mode<synchronous>, transform_indices = @transform_17, window_bounds = array<i64: 1, 32>}, {pipeline_mode = #tpu.pipeline_mode<synchronous>, transform_indices = @transform_18, window_bounds = array<i64: 32, 128>}, {transform_indices = @transform_19, window_bounds = array<i64: 1, 1, 128>}]} {
    %c0 = arith.constant 0 : index
    %c0_0 = arith.constant 0 : index
    %c0_1 = arith.constant 0 : index
    %0 = vector.load %arg1[%c0, %c0_0, %c0_1] : memref<1x8x8xf32, #tpu.memory_space<vmem>>, vector<1x8x8xf32>
    %1 = vector.shape_cast %0 : vector<1x8x8xf32> to vector<8x8xf32>
    %c0_2 = arith.constant 0 : index
    %c0_3 = arith.constant 0 : index
    %c0_4 = arith.constant 0 : index
    %2 = vector.load %arg2[%c0_2, %c0_3, %c0_4] : memref<1x8x32xf32, #tpu.memory_space<vmem>>, vector<1x8x32xf32>
    %3 = vector.shape_cast %2 : vector<1x8x32xf32> to vector<8x32xf32>
    %c0_5 = arith.constant 0 : index
    %c0_6 = arith.constant 0 : index
    %4 = vector.load %arg3[%c0_5, %c0_6] : memref<8x32xbf16, #tpu.memory_space<vmem>>, vector<8x32xbf16>
    %5 = arith.truncf %1 : vector<8x8xf32> to vector<8x8xbf16>
    %cst = arith.constant dense<0.000000e+00> : vector<8x32xf32>
    %6 = tpu.matmul %5, %4, %cst {dimension_numbers = #tpu.dot_dimension_numbers<[1], [0], [0], [1], [0, 0, 1, 1], [], []>} : vector<8x8xbf16>, vector<8x32xbf16>, vector<8x32xf32> -> vector<8x32xf32>
    %c0_7 = arith.constant 0 : index
    %c0_8 = arith.constant 0 : index
    %7 = vector.load %arg4[%c0_7, %c0_8] : memref<1x32xf32, #tpu.memory_space<vmem>>, vector<1x32xf32>
    %8 = vector.broadcast %7 : vector<1x32xf32> to vector<8x32xf32>
    %9 = arith.addf %6, %8 : vector<8x32xf32>
    %10 = arith.addf %9, %3 : vector<8x32xf32>
    %c0_9 = arith.constant 0 : index
    %c0_10 = arith.constant 0 : index
    %c0_11 = arith.constant 0 : index
    %11 = vector.load %arg5[%c0_9, %c0_10, %c0_11] : memref<2x32x96xbf16, #tpu.memory_space<vmem>>, vector<1x32x96xbf16>
    %12 = vector.shape_cast %11 : vector<1x32x96xbf16> to vector<32x96xbf16>
    %13 = arith.truncf %10 : vector<8x32xf32> to vector<8x32xbf16>
    %cst_12 = arith.constant dense<0.000000e+00> : vector<8x96xf32>
    %14 = tpu.matmul %13, %12, %cst_12 {dimension_numbers = #tpu.dot_dimension_numbers<[1], [0], [0], [1], [0, 0, 1, 1], [], []>} : vector<8x32xbf16>, vector<32x96xbf16>, vector<8x96xf32> -> vector<8x96xf32>
    %c0_13 = arith.constant 0 : index
    %c0_14 = arith.constant 0 : index
    %c0_15 = arith.constant 0 : index
    %15 = vector.load %arg6[%c0_13, %c0_14, %c0_15] : memref<2x1x96xf32, #tpu.memory_space<vmem>>, vector<1x1x96xf32>
    %16 = vector.shape_cast %15 : vector<1x1x96xf32> to vector<1x96xf32>
    %17 = vector.broadcast %16 : vector<1x96xf32> to vector<8x96xf32>
    %18 = arith.addf %14, %17 : vector<8x96xf32>
    %c0_16 = arith.constant 0 : index
    %c0_17 = arith.constant 0 : index
    %c0_18 = arith.constant 0 : index
    %19 = vector.load %arg7[%c0_16, %c0_17, %c0_18] : memref<2x32x32xbf16, #tpu.memory_space<vmem>>, vector<1x32x32xbf16>
    %20 = vector.shape_cast %19 : vector<1x32x32xbf16> to vector<32x32xbf16>
    %21 = vector.extract_strided_slice %18 {offsets = [0, 0], sizes = [8, 8], strides = [1, 1]} : vector<8x96xf32> to vector<8x8xf32>
    %22 = vector.extract_strided_slice %18 {offsets = [0, 32], sizes = [8, 8], strides = [1, 1]} : vector<8x96xf32> to vector<8x8xf32>
    %23 = vector.extract_strided_slice %18 {offsets = [0, 64], sizes = [8, 8], strides = [1, 1]} : vector<8x96xf32> to vector<8x8xf32>
    %24 = arith.truncf %21 : vector<8x8xf32> to vector<8x8xbf16>
    %25 = arith.truncf %22 : vector<8x8xf32> to vector<8x8xbf16>
    %cst_19 = arith.constant dense<0.000000e+00> : vector<8x8xf32>
    %26 = tpu.matmul %24, %25, %cst_19 {dimension_numbers = #tpu.dot_dimension_numbers<[1], [1], [0], [0], [0, 0, 1, 0], [], []>} : vector<8x8xbf16>, vector<8x8xbf16>, vector<8x8xf32> -> vector<8x8xf32>
    %cst_20 = arith.constant dense<0xFF800000> : vector<8xf32>
    %27 = vector.multi_reduction <maximumf>, %26, %cst_20 [1] : vector<8x8xf32> to vector<8xf32>
    %28 = vector.shape_cast %27 : vector<8xf32> to vector<8x1xf32>
    %29 = vector.broadcast %28 : vector<8x1xf32> to vector<8x8xf32>
    %30 = arith.subf %26, %29 : vector<8x8xf32>
    %31 = math.exp %30 : vector<8x8xf32>
    %cst_21 = arith.constant dense<0.000000e+00> : vector<8xf32>
    %32 = vector.multi_reduction <add>, %31, %cst_21 [1] : vector<8x8xf32> to vector<8xf32>
    %33 = vector.shape_cast %32 : vector<8xf32> to vector<8x1xf32>
    %34 = tpu.reciprocal %33 {approx = true} : vector<8x1xf32> -> vector<8x1xf32>
    %35 = vector.broadcast %34 : vector<8x1xf32> to vector<8x8xf32>
    %36 = arith.mulf %31, %35 : vector<8x8xf32>
    %37 = arith.truncf %36 : vector<8x8xf32> to vector<8x8xbf16>
    %38 = arith.truncf %23 : vector<8x8xf32> to vector<8x8xbf16>
    %cst_22 = arith.constant dense<0.000000e+00> : vector<8x8xf32>
    %39 = tpu.matmul %37, %38, %cst_22 {dimension_numbers = #tpu.dot_dimension_numbers<[1], [0], [0], [1], [0, 0, 1, 1], [], []>} : vector<8x8xbf16>, vector<8x8xbf16>, vector<8x8xf32> -> vector<8x8xf32>
    %40 = vector.extract_strided_slice %20 {offsets = [0, 0], sizes = [8, 32], strides = [1, 1]} : vector<32x32xbf16> to vector<8x32xbf16>
    %41 = arith.truncf %39 : vector<8x8xf32> to vector<8x8xbf16>
    %cst_23 = arith.constant dense<0.000000e+00> : vector<8x32xf32>
    %42 = tpu.matmul %41, %40, %cst_23 {dimension_numbers = #tpu.dot_dimension_numbers<[1], [0], [0], [1], [0, 0, 1, 1], [], []>} : vector<8x8xbf16>, vector<8x32xbf16>, vector<8x32xf32> -> vector<8x32xf32>
    %43 = vector.extract_strided_slice %18 {offsets = [0, 8], sizes = [8, 8], strides = [1, 1]} : vector<8x96xf32> to vector<8x8xf32>
    %44 = vector.extract_strided_slice %18 {offsets = [0, 40], sizes = [8, 8], strides = [1, 1]} : vector<8x96xf32> to vector<8x8xf32>
    %45 = vector.extract_strided_slice %18 {offsets = [0, 72], sizes = [8, 8], strides = [1, 1]} : vector<8x96xf32> to vector<8x8xf32>
    %46 = arith.truncf %43 : vector<8x8xf32> to vector<8x8xbf16>
    %47 = arith.truncf %44 : vector<8x8xf32> to vector<8x8xbf16>
    %cst_24 = arith.constant dense<0.000000e+00> : vector<8x8xf32>
    %48 = tpu.matmul %46, %47, %cst_24 {dimension_numbers = #tpu.dot_dimension_numbers<[1], [1], [0], [0], [0, 0, 1, 0], [], []>} : vector<8x8xbf16>, vector<8x8xbf16>, vector<8x8xf32> -> vector<8x8xf32>
    %cst_25 = arith.constant dense<0xFF800000> : vector<8xf32>
    %49 = vector.multi_reduction <maximumf>, %48, %cst_25 [1] : vector<8x8xf32> to vector<8xf32>
    %50 = vector.shape_cast %49 : vector<8xf32> to vector<8x1xf32>
    %51 = vector.broadcast %50 : vector<8x1xf32> to vector<8x8xf32>
    %52 = arith.subf %48, %51 : vector<8x8xf32>
    %53 = math.exp %52 : vector<8x8xf32>
    %cst_26 = arith.constant dense<0.000000e+00> : vector<8xf32>
    %54 = vector.multi_reduction <add>, %53, %cst_26 [1] : vector<8x8xf32> to vector<8xf32>
    %55 = vector.shape_cast %54 : vector<8xf32> to vector<8x1xf32>
    %56 = tpu.reciprocal %55 {approx = true} : vector<8x1xf32> -> vector<8x1xf32>
    %57 = vector.broadcast %56 : vector<8x1xf32> to vector<8x8xf32>
    %58 = arith.mulf %53, %57 : vector<8x8xf32>
    %59 = arith.truncf %58 : vector<8x8xf32> to vector<8x8xbf16>
    %60 = arith.truncf %45 : vector<8x8xf32> to vector<8x8xbf16>
    %cst_27 = arith.constant dense<0.000000e+00> : vector<8x8xf32>
    %61 = tpu.matmul %59, %60, %cst_27 {dimension_numbers = #tpu.dot_dimension_numbers<[1], [0], [0], [1], [0, 0, 1, 1], [], []>} : vector<8x8xbf16>, vector<8x8xbf16>, vector<8x8xf32> -> vector<8x8xf32>
    %62 = vector.extract_strided_slice %20 {offsets = [8, 0], sizes = [8, 32], strides = [1, 1]} : vector<32x32xbf16> to vector<8x32xbf16>
    %63 = arith.truncf %61 : vector<8x8xf32> to vector<8x8xbf16>
    %cst_28 = arith.constant dense<0.000000e+00> : vector<8x32xf32>
    %64 = tpu.matmul %63, %62, %cst_28 {dimension_numbers = #tpu.dot_dimension_numbers<[1], [0], [0], [1], [0, 0, 1, 1], [], []>} : vector<8x8xbf16>, vector<8x32xbf16>, vector<8x32xf32> -> vector<8x32xf32>
    %65 = arith.addf %42, %64 : vector<8x32xf32>
    %66 = vector.extract_strided_slice %18 {offsets = [0, 16], sizes = [8, 8], strides = [1, 1]} : vector<8x96xf32> to vector<8x8xf32>
    %67 = vector.extract_strided_slice %18 {offsets = [0, 48], sizes = [8, 8], strides = [1, 1]} : vector<8x96xf32> to vector<8x8xf32>
    %68 = vector.extract_strided_slice %18 {offsets = [0, 80], sizes = [8, 8], strides = [1, 1]} : vector<8x96xf32> to vector<8x8xf32>
    %69 = arith.truncf %66 : vector<8x8xf32> to vector<8x8xbf16>
    %70 = arith.truncf %67 : vector<8x8xf32> to vector<8x8xbf16>
    %cst_29 = arith.constant dense<0.000000e+00> : vector<8x8xf32>
    %71 = tpu.matmul %69, %70, %cst_29 {dimension_numbers = #tpu.dot_dimension_numbers<[1], [1], [0], [0], [0, 0, 1, 0], [], []>} : vector<8x8xbf16>, vector<8x8xbf16>, vector<8x8xf32> -> vector<8x8xf32>
    %cst_30 = arith.constant dense<0xFF800000> : vector<8xf32>
    %72 = vector.multi_reduction <maximumf>, %71, %cst_30 [1] : vector<8x8xf32> to vector<8xf32>
    %73 = vector.shape_cast %72 : vector<8xf32> to vector<8x1xf32>
    %74 = vector.broadcast %73 : vector<8x1xf32> to vector<8x8xf32>
    %75 = arith.subf %71, %74 : vector<8x8xf32>
    %76 = math.exp %75 : vector<8x8xf32>
    %cst_31 = arith.constant dense<0.000000e+00> : vector<8xf32>
    %77 = vector.multi_reduction <add>, %76, %cst_31 [1] : vector<8x8xf32> to vector<8xf32>
    %78 = vector.shape_cast %77 : vector<8xf32> to vector<8x1xf32>
    %79 = tpu.reciprocal %78 {approx = true} : vector<8x1xf32> -> vector<8x1xf32>
    %80 = vector.broadcast %79 : vector<8x1xf32> to vector<8x8xf32>
    %81 = arith.mulf %76, %80 : vector<8x8xf32>
    %82 = arith.truncf %81 : vector<8x8xf32> to vector<8x8xbf16>
    %83 = arith.truncf %68 : vector<8x8xf32> to vector<8x8xbf16>
    %cst_32 = arith.constant dense<0.000000e+00> : vector<8x8xf32>
    %84 = tpu.matmul %82, %83, %cst_32 {dimension_numbers = #tpu.dot_dimension_numbers<[1], [0], [0], [1], [0, 0, 1, 1], [], []>} : vector<8x8xbf16>, vector<8x8xbf16>, vector<8x8xf32> -> vector<8x8xf32>
    %85 = vector.extract_strided_slice %20 {offsets = [16, 0], sizes = [8, 32], strides = [1, 1]} : vector<32x32xbf16> to vector<8x32xbf16>
    %86 = arith.truncf %84 : vector<8x8xf32> to vector<8x8xbf16>
    %cst_33 = arith.constant dense<0.000000e+00> : vector<8x32xf32>
    %87 = tpu.matmul %86, %85, %cst_33 {dimension_numbers = #tpu.dot_dimension_numbers<[1], [0], [0], [1], [0, 0, 1, 1], [], []>} : vector<8x8xbf16>, vector<8x32xbf16>, vector<8x32xf32> -> vector<8x32xf32>
    %88 = arith.addf %65, %87 : vector<8x32xf32>
    %89 = vector.extract_strided_slice %18 {offsets = [0, 24], sizes = [8, 8], strides = [1, 1]} : vector<8x96xf32> to vector<8x8xf32>
    %90 = vector.extract_strided_slice %18 {offsets = [0, 56], sizes = [8, 8], strides = [1, 1]} : vector<8x96xf32> to vector<8x8xf32>
    %91 = vector.extract_strided_slice %18 {offsets = [0, 88], sizes = [8, 8], strides = [1, 1]} : vector<8x96xf32> to vector<8x8xf32>
    %92 = arith.truncf %89 : vector<8x8xf32> to vector<8x8xbf16>
    %93 = arith.truncf %90 : vector<8x8xf32> to vector<8x8xbf16>
    %cst_34 = arith.constant dense<0.000000e+00> : vector<8x8xf32>
    %94 = tpu.matmul %92, %93, %cst_34 {dimension_numbers = #tpu.dot_dimension_numbers<[1], [1], [0], [0], [0, 0, 1, 0], [], []>} : vector<8x8xbf16>, vector<8x8xbf16>, vector<8x8xf32> -> vector<8x8xf32>
    %cst_35 = arith.constant dense<0xFF800000> : vector<8xf32>
    %95 = vector.multi_reduction <maximumf>, %94, %cst_35 [1] : vector<8x8xf32> to vector<8xf32>
    %96 = vector.shape_cast %95 : vector<8xf32> to vector<8x1xf32>
    %97 = vector.broadcast %96 : vector<8x1xf32> to vector<8x8xf32>
    %98 = arith.subf %94, %97 : vector<8x8xf32>
    %99 = math.exp %98 : vector<8x8xf32>
    %cst_36 = arith.constant dense<0.000000e+00> : vector<8xf32>
    %100 = vector.multi_reduction <add>, %99, %cst_36 [1] : vector<8x8xf32> to vector<8xf32>
    %101 = vector.shape_cast %100 : vector<8xf32> to vector<8x1xf32>
    %102 = tpu.reciprocal %101 {approx = true} : vector<8x1xf32> -> vector<8x1xf32>
    %103 = vector.broadcast %102 : vector<8x1xf32> to vector<8x8xf32>
    %104 = arith.mulf %99, %103 : vector<8x8xf32>
    %105 = arith.truncf %104 : vector<8x8xf32> to vector<8x8xbf16>
    %106 = arith.truncf %91 : vector<8x8xf32> to vector<8x8xbf16>
    %cst_37 = arith.constant dense<0.000000e+00> : vector<8x8xf32>
    %107 = tpu.matmul %105, %106, %cst_37 {dimension_numbers = #tpu.dot_dimension_numbers<[1], [0], [0], [1], [0, 0, 1, 1], [], []>} : vector<8x8xbf16>, vector<8x8xbf16>, vector<8x8xf32> -> vector<8x8xf32>
    %108 = vector.extract_strided_slice %20 {offsets = [24, 0], sizes = [8, 32], strides = [1, 1]} : vector<32x32xbf16> to vector<8x32xbf16>
    %109 = arith.truncf %107 : vector<8x8xf32> to vector<8x8xbf16>
    %cst_38 = arith.constant dense<0.000000e+00> : vector<8x32xf32>
    %110 = tpu.matmul %109, %108, %cst_38 {dimension_numbers = #tpu.dot_dimension_numbers<[1], [0], [0], [1], [0, 0, 1, 1], [], []>} : vector<8x8xbf16>, vector<8x32xbf16>, vector<8x32xf32> -> vector<8x32xf32>
    %111 = arith.addf %88, %110 : vector<8x32xf32>
    %112 = arith.addf %10, %111 : vector<8x32xf32>
    %c0_39 = arith.constant 0 : index
    %c0_40 = arith.constant 0 : index
    %c0_41 = arith.constant 0 : index
    %113 = vector.load %arg8[%c0_39, %c0_40, %c0_41] : memref<2x1x32xf32, #tpu.memory_space<vmem>>, vector<1x1x32xf32>
    %114 = vector.shape_cast %113 : vector<1x1x32xf32> to vector<1x32xf32>
    %115 = vector.broadcast %114 : vector<1x32xf32> to vector<8x32xf32>
    %116 = arith.addf %112, %115 : vector<8x32xf32>
    %c0_42 = arith.constant 0 : index
    %c0_43 = arith.constant 0 : index
    %c0_44 = arith.constant 0 : index
    %117 = vector.load %arg13[%c0_42, %c0_43, %c0_44] : memref<2x1x32xf32, #tpu.memory_space<vmem>>, vector<1x1x32xf32>
    %118 = vector.shape_cast %117 : vector<1x1x32xf32> to vector<1x32xf32>
    %c0_45 = arith.constant 0 : index
    %c0_46 = arith.constant 0 : index
    %c0_47 = arith.constant 0 : index
    %119 = vector.load %arg14[%c0_45, %c0_46, %c0_47] : memref<2x1x32xf32, #tpu.memory_space<vmem>>, vector<1x1x32xf32>
    %120 = vector.shape_cast %119 : vector<1x1x32xf32> to vector<1x32xf32>
    %cst_48 = arith.constant dense<0.000000e+00> : vector<8xf32>
    %121 = vector.multi_reduction <add>, %116, %cst_48 [1] : vector<8x32xf32> to vector<8xf32>
    %122 = vector.shape_cast %121 : vector<8xf32> to vector<8x1xf32>
    %cst_49 = arith.constant 3.200000e+01 : f32
    %123 = vector.broadcast %cst_49 : f32 to vector<8x1xf32>
    %124 = arith.divf %122, %123 : vector<8x1xf32>
    %125 = vector.broadcast %124 : vector<8x1xf32> to vector<8x32xf32>
    %126 = arith.subf %116, %125 : vector<8x32xf32>
    %127 = arith.mulf %126, %126 : vector<8x32xf32>
    %cst_50 = arith.constant dense<0.000000e+00> : vector<8xf32>
    %128 = vector.multi_reduction <add>, %127, %cst_50 [1] : vector<8x32xf32> to vector<8xf32>
    %129 = vector.shape_cast %128 : vector<8xf32> to vector<8x1xf32>
    %cst_51 = arith.constant 3.200000e+01 : f32
    %130 = vector.broadcast %cst_51 : f32 to vector<8x1xf32>
    %131 = arith.divf %129, %130 : vector<8x1xf32>
    %cst_52 = arith.constant 9.99999974E-6 : f32
    %132 = vector.broadcast %cst_52 : f32 to vector<8x1xf32>
    %133 = arith.addf %131, %132 : vector<8x1xf32>
    %134 = math.rsqrt %133 : vector<8x1xf32>
    %135 = vector.broadcast %134 : vector<8x1xf32> to vector<8x32xf32>
    %136 = arith.mulf %126, %135 : vector<8x32xf32>
    %137 = vector.broadcast %118 : vector<1x32xf32> to vector<8x32xf32>
    %138 = arith.mulf %136, %137 : vector<8x32xf32>
    %139 = vector.broadcast %120 : vector<1x32xf32> to vector<8x32xf32>
    %140 = arith.addf %138, %139 : vector<8x32xf32>
    %c0_53 = arith.constant 0 : index
    %c0_54 = arith.constant 0 : index
    %c0_55 = arith.constant 0 : index
    %141 = vector.load %arg9[%c0_53, %c0_54, %c0_55] : memref<2x32x64xbf16, #tpu.memory_space<vmem>>, vector<1x32x64xbf16>
    %142 = vector.shape_cast %141 : vector<1x32x64xbf16> to vector<32x64xbf16>
    %143 = arith.truncf %140 : vector<8x32xf32> to vector<8x32xbf16>
    %cst_56 = arith.constant dense<0.000000e+00> : vector<8x64xf32>
    %144 = tpu.matmul %143, %142, %cst_56 {dimension_numbers = #tpu.dot_dimension_numbers<[1], [0], [0], [1], [0, 0, 1, 1], [], []>} : vector<8x32xbf16>, vector<32x64xbf16>, vector<8x64xf32> -> vector<8x64xf32>
    %c0_57 = arith.constant 0 : index
    %c0_58 = arith.constant 0 : index
    %c0_59 = arith.constant 0 : index
    %145 = vector.load %arg10[%c0_57, %c0_58, %c0_59] : memref<2x1x64xf32, #tpu.memory_space<vmem>>, vector<1x1x64xf32>
    %146 = vector.shape_cast %145 : vector<1x1x64xf32> to vector<1x64xf32>
    %147 = vector.broadcast %146 : vector<1x64xf32> to vector<8x64xf32>
    %148 = arith.addf %144, %147 : vector<8x64xf32>
    %149 = arith.mulf %148, %148 : vector<8x64xf32>
    %150 = arith.mulf %148, %149 : vector<8x64xf32>
    %cst_60 = arith.constant 4.471500e-02 : f32
    %151 = vector.broadcast %cst_60 : f32 to vector<8x64xf32>
    %152 = arith.mulf %151, %150 : vector<8x64xf32>
    %153 = arith.addf %148, %152 : vector<8x64xf32>
    %cst_61 = arith.constant 0.797884583 : f32
    %154 = vector.broadcast %cst_61 : f32 to vector<8x64xf32>
    %155 = arith.mulf %154, %153 : vector<8x64xf32>
    %156 = math.tanh %155 : vector<8x64xf32>
    %cst_62 = arith.constant 1.000000e+00 : f32
    %157 = vector.broadcast %cst_62 : f32 to vector<8x64xf32>
    %158 = arith.addf %157, %156 : vector<8x64xf32>
    %cst_63 = arith.constant 5.000000e-01 : f32
    %159 = vector.broadcast %cst_63 : f32 to vector<8x64xf32>
    %160 = arith.mulf %159, %158 : vector<8x64xf32>
    %161 = arith.mulf %148, %160 : vector<8x64xf32>
    %c0_64 = arith.constant 0 : index
    %c0_65 = arith.constant 0 : index
    %c0_66 = arith.constant 0 : index
    %162 = vector.load %arg11[%c0_64, %c0_65, %c0_66] : memref<2x64x32xbf16, #tpu.memory_space<vmem>>, vector<1x64x32xbf16>
    %163 = vector.shape_cast %162 : vector<1x64x32xbf16> to vector<64x32xbf16>
    %164 = arith.truncf %161 : vector<8x64xf32> to vector<8x64xbf16>
    %cst_67 = arith.constant dense<0.000000e+00> : vector<8x32xf32>
    %165 = tpu.matmul %164, %163, %cst_67 {dimension_numbers = #tpu.dot_dimension_numbers<[1], [0], [0], [1], [0, 0, 1, 1], [], []>} : vector<8x64xbf16>, vector<64x32xbf16>, vector<8x32xf32> -> vector<8x32xf32>
    %c0_68 = arith.constant 0 : index
    %c0_69 = arith.constant 0 : index
    %c0_70 = arith.constant 0 : index
    %166 = vector.load %arg12[%c0_68, %c0_69, %c0_70] : memref<2x1x32xf32, #tpu.memory_space<vmem>>, vector<1x1x32xf32>
    %167 = vector.shape_cast %166 : vector<1x1x32xf32> to vector<1x32xf32>
    %168 = vector.broadcast %167 : vector<1x32xf32> to vector<8x32xf32>
    %169 = arith.addf %165, %168 : vector<8x32xf32>
    %170 = arith.addf %140, %169 : vector<8x32xf32>
    %c0_71 = arith.constant 0 : index
    %c0_72 = arith.constant 0 : index
    %c0_73 = arith.constant 0 : index
    %171 = vector.load %arg15[%c0_71, %c0_72, %c0_73] : memref<2x1x32xf32, #tpu.memory_space<vmem>>, vector<1x1x32xf32>
    %172 = vector.shape_cast %171 : vector<1x1x32xf32> to vector<1x32xf32>
    %c0_74 = arith.constant 0 : index
    %c0_75 = arith.constant 0 : index
    %c0_76 = arith.constant 0 : index
    %173 = vector.load %arg16[%c0_74, %c0_75, %c0_76] : memref<2x1x32xf32, #tpu.memory_space<vmem>>, vector<1x1x32xf32>
    %174 = vector.shape_cast %173 : vector<1x1x32xf32> to vector<1x32xf32>
    %cst_77 = arith.constant dense<0.000000e+00> : vector<8xf32>
    %175 = vector.multi_reduction <add>, %170, %cst_77 [1] : vector<8x32xf32> to vector<8xf32>
    %176 = vector.shape_cast %175 : vector<8xf32> to vector<8x1xf32>
    %cst_78 = arith.constant 3.200000e+01 : f32
    %177 = vector.broadcast %cst_78 : f32 to vector<8x1xf32>
    %178 = arith.divf %176, %177 : vector<8x1xf32>
    %179 = vector.broadcast %178 : vector<8x1xf32> to vector<8x32xf32>
    %180 = arith.subf %170, %179 : vector<8x32xf32>
    %181 = arith.mulf %180, %180 : vector<8x32xf32>
    %cst_79 = arith.constant dense<0.000000e+00> : vector<8xf32>
    %182 = vector.multi_reduction <add>, %181, %cst_79 [1] : vector<8x32xf32> to vector<8xf32>
    %183 = vector.shape_cast %182 : vector<8xf32> to vector<8x1xf32>
    %cst_80 = arith.constant 3.200000e+01 : f32
    %184 = vector.broadcast %cst_80 : f32 to vector<8x1xf32>
    %185 = arith.divf %183, %184 : vector<8x1xf32>
    %cst_81 = arith.constant 9.99999974E-6 : f32
    %186 = vector.broadcast %cst_81 : f32 to vector<8x1xf32>
    %187 = arith.addf %185, %186 : vector<8x1xf32>
    %188 = math.rsqrt %187 : vector<8x1xf32>
    %189 = vector.broadcast %188 : vector<8x1xf32> to vector<8x32xf32>
    %190 = arith.mulf %180, %189 : vector<8x32xf32>
    %191 = vector.broadcast %172 : vector<1x32xf32> to vector<8x32xf32>
    %192 = arith.mulf %190, %191 : vector<8x32xf32>
    %193 = vector.broadcast %174 : vector<1x32xf32> to vector<8x32xf32>
    %194 = arith.addf %192, %193 : vector<8x32xf32>
    %c1 = arith.constant 1 : index
    %c0_82 = arith.constant 0 : index
    %c0_83 = arith.constant 0 : index
    %195 = vector.load %arg5[%c1, %c0_82, %c0_83] : memref<2x32x96xbf16, #tpu.memory_space<vmem>>, vector<1x32x96xbf16>
    %196 = vector.shape_cast %195 : vector<1x32x96xbf16> to vector<32x96xbf16>
    %197 = arith.truncf %194 : vector<8x32xf32> to vector<8x32xbf16>
    %cst_84 = arith.constant dense<0.000000e+00> : vector<8x96xf32>
    %198 = tpu.matmul %197, %196, %cst_84 {dimension_numbers = #tpu.dot_dimension_numbers<[1], [0], [0], [1], [0, 0, 1, 1], [], []>} : vector<8x32xbf16>, vector<32x96xbf16>, vector<8x96xf32> -> vector<8x96xf32>
    %c1_85 = arith.constant 1 : index
    %c0_86 = arith.constant 0 : index
    %c0_87 = arith.constant 0 : index
    %199 = vector.load %arg6[%c1_85, %c0_86, %c0_87] : memref<2x1x96xf32, #tpu.memory_space<vmem>>, vector<1x1x96xf32>
    %200 = vector.shape_cast %199 : vector<1x1x96xf32> to vector<1x96xf32>
    %201 = vector.broadcast %200 : vector<1x96xf32> to vector<8x96xf32>
    %202 = arith.addf %198, %201 : vector<8x96xf32>
    %c1_88 = arith.constant 1 : index
    %c0_89 = arith.constant 0 : index
    %c0_90 = arith.constant 0 : index
    %203 = vector.load %arg7[%c1_88, %c0_89, %c0_90] : memref<2x32x32xbf16, #tpu.memory_space<vmem>>, vector<1x32x32xbf16>
    %204 = vector.shape_cast %203 : vector<1x32x32xbf16> to vector<32x32xbf16>
    %205 = vector.extract_strided_slice %202 {offsets = [0, 0], sizes = [8, 8], strides = [1, 1]} : vector<8x96xf32> to vector<8x8xf32>
    %206 = vector.extract_strided_slice %202 {offsets = [0, 32], sizes = [8, 8], strides = [1, 1]} : vector<8x96xf32> to vector<8x8xf32>
    %207 = vector.extract_strided_slice %202 {offsets = [0, 64], sizes = [8, 8], strides = [1, 1]} : vector<8x96xf32> to vector<8x8xf32>
    %208 = arith.truncf %205 : vector<8x8xf32> to vector<8x8xbf16>
    %209 = arith.truncf %206 : vector<8x8xf32> to vector<8x8xbf16>
    %cst_91 = arith.constant dense<0.000000e+00> : vector<8x8xf32>
    %210 = tpu.matmul %208, %209, %cst_91 {dimension_numbers = #tpu.dot_dimension_numbers<[1], [1], [0], [0], [0, 0, 1, 0], [], []>} : vector<8x8xbf16>, vector<8x8xbf16>, vector<8x8xf32> -> vector<8x8xf32>
    %cst_92 = arith.constant dense<0xFF800000> : vector<8xf32>
    %211 = vector.multi_reduction <maximumf>, %210, %cst_92 [1] : vector<8x8xf32> to vector<8xf32>
    %212 = vector.shape_cast %211 : vector<8xf32> to vector<8x1xf32>
    %213 = vector.broadcast %212 : vector<8x1xf32> to vector<8x8xf32>
    %214 = arith.subf %210, %213 : vector<8x8xf32>
    %215 = math.exp %214 : vector<8x8xf32>
    %cst_93 = arith.constant dense<0.000000e+00> : vector<8xf32>
    %216 = vector.multi_reduction <add>, %215, %cst_93 [1] : vector<8x8xf32> to vector<8xf32>
    %217 = vector.shape_cast %216 : vector<8xf32> to vector<8x1xf32>
    %218 = tpu.reciprocal %217 {approx = true} : vector<8x1xf32> -> vector<8x1xf32>
    %219 = vector.broadcast %218 : vector<8x1xf32> to vector<8x8xf32>
    %220 = arith.mulf %215, %219 : vector<8x8xf32>
    %221 = arith.truncf %220 : vector<8x8xf32> to vector<8x8xbf16>
    %222 = arith.truncf %207 : vector<8x8xf32> to vector<8x8xbf16>
    %cst_94 = arith.constant dense<0.000000e+00> : vector<8x8xf32>
    %223 = tpu.matmul %221, %222, %cst_94 {dimension_numbers = #tpu.dot_dimension_numbers<[1], [0], [0], [1], [0, 0, 1, 1], [], []>} : vector<8x8xbf16>, vector<8x8xbf16>, vector<8x8xf32> -> vector<8x8xf32>
    %224 = vector.extract_strided_slice %204 {offsets = [0, 0], sizes = [8, 32], strides = [1, 1]} : vector<32x32xbf16> to vector<8x32xbf16>
    %225 = arith.truncf %223 : vector<8x8xf32> to vector<8x8xbf16>
    %cst_95 = arith.constant dense<0.000000e+00> : vector<8x32xf32>
    %226 = tpu.matmul %225, %224, %cst_95 {dimension_numbers = #tpu.dot_dimension_numbers<[1], [0], [0], [1], [0, 0, 1, 1], [], []>} : vector<8x8xbf16>, vector<8x32xbf16>, vector<8x32xf32> -> vector<8x32xf32>
    %227 = vector.extract_strided_slice %202 {offsets = [0, 8], sizes = [8, 8], strides = [1, 1]} : vector<8x96xf32> to vector<8x8xf32>
    %228 = vector.extract_strided_slice %202 {offsets = [0, 40], sizes = [8, 8], strides = [1, 1]} : vector<8x96xf32> to vector<8x8xf32>
    %229 = vector.extract_strided_slice %202 {offsets = [0, 72], sizes = [8, 8], strides = [1, 1]} : vector<8x96xf32> to vector<8x8xf32>
    %230 = arith.truncf %227 : vector<8x8xf32> to vector<8x8xbf16>
    %231 = arith.truncf %228 : vector<8x8xf32> to vector<8x8xbf16>
    %cst_96 = arith.constant dense<0.000000e+00> : vector<8x8xf32>
    %232 = tpu.matmul %230, %231, %cst_96 {dimension_numbers = #tpu.dot_dimension_numbers<[1], [1], [0], [0], [0, 0, 1, 0], [], []>} : vector<8x8xbf16>, vector<8x8xbf16>, vector<8x8xf32> -> vector<8x8xf32>
    %cst_97 = arith.constant dense<0xFF800000> : vector<8xf32>
    %233 = vector.multi_reduction <maximumf>, %232, %cst_97 [1] : vector<8x8xf32> to vector<8xf32>
    %234 = vector.shape_cast %233 : vector<8xf32> to vector<8x1xf32>
    %235 = vector.broadcast %234 : vector<8x1xf32> to vector<8x8xf32>
    %236 = arith.subf %232, %235 : vector<8x8xf32>
    %237 = math.exp %236 : vector<8x8xf32>
    %cst_98 = arith.constant dense<0.000000e+00> : vector<8xf32>
    %238 = vector.multi_reduction <add>, %237, %cst_98 [1] : vector<8x8xf32> to vector<8xf32>
    %239 = vector.shape_cast %238 : vector<8xf32> to vector<8x1xf32>
    %240 = tpu.reciprocal %239 {approx = true} : vector<8x1xf32> -> vector<8x1xf32>
    %241 = vector.broadcast %240 : vector<8x1xf32> to vector<8x8xf32>
    %242 = arith.mulf %237, %241 : vector<8x8xf32>
    %243 = arith.truncf %242 : vector<8x8xf32> to vector<8x8xbf16>
    %244 = arith.truncf %229 : vector<8x8xf32> to vector<8x8xbf16>
    %cst_99 = arith.constant dense<0.000000e+00> : vector<8x8xf32>
    %245 = tpu.matmul %243, %244, %cst_99 {dimension_numbers = #tpu.dot_dimension_numbers<[1], [0], [0], [1], [0, 0, 1, 1], [], []>} : vector<8x8xbf16>, vector<8x8xbf16>, vector<8x8xf32> -> vector<8x8xf32>
    %246 = vector.extract_strided_slice %204 {offsets = [8, 0], sizes = [8, 32], strides = [1, 1]} : vector<32x32xbf16> to vector<8x32xbf16>
    %247 = arith.truncf %245 : vector<8x8xf32> to vector<8x8xbf16>
    %cst_100 = arith.constant dense<0.000000e+00> : vector<8x32xf32>
    %248 = tpu.matmul %247, %246, %cst_100 {dimension_numbers = #tpu.dot_dimension_numbers<[1], [0], [0], [1], [0, 0, 1, 1], [], []>} : vector<8x8xbf16>, vector<8x32xbf16>, vector<8x32xf32> -> vector<8x32xf32>
    %249 = arith.addf %226, %248 : vector<8x32xf32>
    %250 = vector.extract_strided_slice %202 {offsets = [0, 16], sizes = [8, 8], strides = [1, 1]} : vector<8x96xf32> to vector<8x8xf32>
    %251 = vector.extract_strided_slice %202 {offsets = [0, 48], sizes = [8, 8], strides = [1, 1]} : vector<8x96xf32> to vector<8x8xf32>
    %252 = vector.extract_strided_slice %202 {offsets = [0, 80], sizes = [8, 8], strides = [1, 1]} : vector<8x96xf32> to vector<8x8xf32>
    %253 = arith.truncf %250 : vector<8x8xf32> to vector<8x8xbf16>
    %254 = arith.truncf %251 : vector<8x8xf32> to vector<8x8xbf16>
    %cst_101 = arith.constant dense<0.000000e+00> : vector<8x8xf32>
    %255 = tpu.matmul %253, %254, %cst_101 {dimension_numbers = #tpu.dot_dimension_numbers<[1], [1], [0], [0], [0, 0, 1, 0], [], []>} : vector<8x8xbf16>, vector<8x8xbf16>, vector<8x8xf32> -> vector<8x8xf32>
    %cst_102 = arith.constant dense<0xFF800000> : vector<8xf32>
    %256 = vector.multi_reduction <maximumf>, %255, %cst_102 [1] : vector<8x8xf32> to vector<8xf32>
    %257 = vector.shape_cast %256 : vector<8xf32> to vector<8x1xf32>
    %258 = vector.broadcast %257 : vector<8x1xf32> to vector<8x8xf32>
    %259 = arith.subf %255, %258 : vector<8x8xf32>
    %260 = math.exp %259 : vector<8x8xf32>
    %cst_103 = arith.constant dense<0.000000e+00> : vector<8xf32>
    %261 = vector.multi_reduction <add>, %260, %cst_103 [1] : vector<8x8xf32> to vector<8xf32>
    %262 = vector.shape_cast %261 : vector<8xf32> to vector<8x1xf32>
    %263 = tpu.reciprocal %262 {approx = true} : vector<8x1xf32> -> vector<8x1xf32>
    %264 = vector.broadcast %263 : vector<8x1xf32> to vector<8x8xf32>
    %265 = arith.mulf %260, %264 : vector<8x8xf32>
    %266 = arith.truncf %265 : vector<8x8xf32> to vector<8x8xbf16>
    %267 = arith.truncf %252 : vector<8x8xf32> to vector<8x8xbf16>
    %cst_104 = arith.constant dense<0.000000e+00> : vector<8x8xf32>
    %268 = tpu.matmul %266, %267, %cst_104 {dimension_numbers = #tpu.dot_dimension_numbers<[1], [0], [0], [1], [0, 0, 1, 1], [], []>} : vector<8x8xbf16>, vector<8x8xbf16>, vector<8x8xf32> -> vector<8x8xf32>
    %269 = vector.extract_strided_slice %204 {offsets = [16, 0], sizes = [8, 32], strides = [1, 1]} : vector<32x32xbf16> to vector<8x32xbf16>
    %270 = arith.truncf %268 : vector<8x8xf32> to vector<8x8xbf16>
    %cst_105 = arith.constant dense<0.000000e+00> : vector<8x32xf32>
    %271 = tpu.matmul %270, %269, %cst_105 {dimension_numbers = #tpu.dot_dimension_numbers<[1], [0], [0], [1], [0, 0, 1, 1], [], []>} : vector<8x8xbf16>, vector<8x32xbf16>, vector<8x32xf32> -> vector<8x32xf32>
    %272 = arith.addf %249, %271 : vector<8x32xf32>
    %273 = vector.extract_strided_slice %202 {offsets = [0, 24], sizes = [8, 8], strides = [1, 1]} : vector<8x96xf32> to vector<8x8xf32>
    %274 = vector.extract_strided_slice %202 {offsets = [0, 56], sizes = [8, 8], strides = [1, 1]} : vector<8x96xf32> to vector<8x8xf32>
    %275 = vector.extract_strided_slice %202 {offsets = [0, 88], sizes = [8, 8], strides = [1, 1]} : vector<8x96xf32> to vector<8x8xf32>
    %276 = arith.truncf %273 : vector<8x8xf32> to vector<8x8xbf16>
    %277 = arith.truncf %274 : vector<8x8xf32> to vector<8x8xbf16>
    %cst_106 = arith.constant dense<0.000000e+00> : vector<8x8xf32>
    %278 = tpu.matmul %276, %277, %cst_106 {dimension_numbers = #tpu.dot_dimension_numbers<[1], [1], [0], [0], [0, 0, 1, 0], [], []>} : vector<8x8xbf16>, vector<8x8xbf16>, vector<8x8xf32> -> vector<8x8xf32>
    %cst_107 = arith.constant dense<0xFF800000> : vector<8xf32>
    %279 = vector.multi_reduction <maximumf>, %278, %cst_107 [1] : vector<8x8xf32> to vector<8xf32>
    %280 = vector.shape_cast %279 : vector<8xf32> to vector<8x1xf32>
    %281 = vector.broadcast %280 : vector<8x1xf32> to vector<8x8xf32>
    %282 = arith.subf %278, %281 : vector<8x8xf32>
    %283 = math.exp %282 : vector<8x8xf32>
    %cst_108 = arith.constant dense<0.000000e+00> : vector<8xf32>
    %284 = vector.multi_reduction <add>, %283, %cst_108 [1] : vector<8x8xf32> to vector<8xf32>
    %285 = vector.shape_cast %284 : vector<8xf32> to vector<8x1xf32>
    %286 = tpu.reciprocal %285 {approx = true} : vector<8x1xf32> -> vector<8x1xf32>
    %287 = vector.broadcast %286 : vector<8x1xf32> to vector<8x8xf32>
    %288 = arith.mulf %283, %287 : vector<8x8xf32>
    %289 = arith.truncf %288 : vector<8x8xf32> to vector<8x8xbf16>
    %290 = arith.truncf %275 : vector<8x8xf32> to vector<8x8xbf16>
    %cst_109 = arith.constant dense<0.000000e+00> : vector<8x8xf32>
    %291 = tpu.matmul %289, %290, %cst_109 {dimension_numbers = #tpu.dot_dimension_numbers<[1], [0], [0], [1], [0, 0, 1, 1], [], []>} : vector<8x8xbf16>, vector<8x8xbf16>, vector<8x8xf32> -> vector<8x8xf32>
    %292 = vector.extract_strided_slice %204 {offsets = [24, 0], sizes = [8, 32], strides = [1, 1]} : vector<32x32xbf16> to vector<8x32xbf16>
    %293 = arith.truncf %291 : vector<8x8xf32> to vector<8x8xbf16>
    %cst_110 = arith.constant dense<0.000000e+00> : vector<8x32xf32>
    %294 = tpu.matmul %293, %292, %cst_110 {dimension_numbers = #tpu.dot_dimension_numbers<[1], [0], [0], [1], [0, 0, 1, 1], [], []>} : vector<8x8xbf16>, vector<8x32xbf16>, vector<8x32xf32> -> vector<8x32xf32>
    %295 = arith.addf %272, %294 : vector<8x32xf32>
    %296 = arith.addf %194, %295 : vector<8x32xf32>
    %c1_111 = arith.constant 1 : index
    %c0_112 = arith.constant 0 : index
    %c0_113 = arith.constant 0 : index
    %297 = vector.load %arg8[%c1_111, %c0_112, %c0_113] : memref<2x1x32xf32, #tpu.memory_space<vmem>>, vector<1x1x32xf32>
    %298 = vector.shape_cast %297 : vector<1x1x32xf32> to vector<1x32xf32>
    %299 = vector.broadcast %298 : vector<1x32xf32> to vector<8x32xf32>
    %300 = arith.addf %296, %299 : vector<8x32xf32>
    %c1_114 = arith.constant 1 : index
    %c0_115 = arith.constant 0 : index
    %c0_116 = arith.constant 0 : index
    %301 = vector.load %arg13[%c1_114, %c0_115, %c0_116] : memref<2x1x32xf32, #tpu.memory_space<vmem>>, vector<1x1x32xf32>
    %302 = vector.shape_cast %301 : vector<1x1x32xf32> to vector<1x32xf32>
    %c1_117 = arith.constant 1 : index
    %c0_118 = arith.constant 0 : index
    %c0_119 = arith.constant 0 : index
    %303 = vector.load %arg14[%c1_117, %c0_118, %c0_119] : memref<2x1x32xf32, #tpu.memory_space<vmem>>, vector<1x1x32xf32>
    %304 = vector.shape_cast %303 : vector<1x1x32xf32> to vector<1x32xf32>
    %cst_120 = arith.constant dense<0.000000e+00> : vector<8xf32>
    %305 = vector.multi_reduction <add>, %300, %cst_120 [1] : vector<8x32xf32> to vector<8xf32>
    %306 = vector.shape_cast %305 : vector<8xf32> to vector<8x1xf32>
    %cst_121 = arith.constant 3.200000e+01 : f32
    %307 = vector.broadcast %cst_121 : f32 to vector<8x1xf32>
    %308 = arith.divf %306, %307 : vector<8x1xf32>
    %309 = vector.broadcast %308 : vector<8x1xf32> to vector<8x32xf32>
    %310 = arith.subf %300, %309 : vector<8x32xf32>
    %311 = arith.mulf %310, %310 : vector<8x32xf32>
    %cst_122 = arith.constant dense<0.000000e+00> : vector<8xf32>
    %312 = vector.multi_reduction <add>, %311, %cst_122 [1] : vector<8x32xf32> to vector<8xf32>
    %313 = vector.shape_cast %312 : vector<8xf32> to vector<8x1xf32>
    %cst_123 = arith.constant 3.200000e+01 : f32
    %314 = vector.broadcast %cst_123 : f32 to vector<8x1xf32>
    %315 = arith.divf %313, %314 : vector<8x1xf32>
    %cst_124 = arith.constant 9.99999974E-6 : f32
    %316 = vector.broadcast %cst_124 : f32 to vector<8x1xf32>
    %317 = arith.addf %315, %316 : vector<8x1xf32>
    %318 = math.rsqrt %317 : vector<8x1xf32>
    %319 = vector.broadcast %318 : vector<8x1xf32> to vector<8x32xf32>
    %320 = arith.mulf %310, %319 : vector<8x32xf32>
    %321 = vector.broadcast %302 : vector<1x32xf32> to vector<8x32xf32>
    %322 = arith.mulf %320, %321 : vector<8x32xf32>
    %323 = vector.broadcast %304 : vector<1x32xf32> to vector<8x32xf32>
    %324 = arith.addf %322, %323 : vector<8x32xf32>
    %c1_125 = arith.constant 1 : index
    %c0_126 = arith.constant 0 : index
    %c0_127 = arith.constant 0 : index
    %325 = vector.load %arg9[%c1_125, %c0_126, %c0_127] : memref<2x32x64xbf16, #tpu.memory_space<vmem>>, vector<1x32x64xbf16>
    %326 = vector.shape_cast %325 : vector<1x32x64xbf16> to vector<32x64xbf16>
    %327 = arith.truncf %324 : vector<8x32xf32> to vector<8x32xbf16>
    %cst_128 = arith.constant dense<0.000000e+00> : vector<8x64xf32>
    %328 = tpu.matmul %327, %326, %cst_128 {dimension_numbers = #tpu.dot_dimension_numbers<[1], [0], [0], [1], [0, 0, 1, 1], [], []>} : vector<8x32xbf16>, vector<32x64xbf16>, vector<8x64xf32> -> vector<8x64xf32>
    %c1_129 = arith.constant 1 : index
    %c0_130 = arith.constant 0 : index
    %c0_131 = arith.constant 0 : index
    %329 = vector.load %arg10[%c1_129, %c0_130, %c0_131] : memref<2x1x64xf32, #tpu.memory_space<vmem>>, vector<1x1x64xf32>
    %330 = vector.shape_cast %329 : vector<1x1x64xf32> to vector<1x64xf32>
    %331 = vector.broadcast %330 : vector<1x64xf32> to vector<8x64xf32>
    %332 = arith.addf %328, %331 : vector<8x64xf32>
    %333 = arith.mulf %332, %332 : vector<8x64xf32>
    %334 = arith.mulf %332, %333 : vector<8x64xf32>
    %cst_132 = arith.constant 4.471500e-02 : f32
    %335 = vector.broadcast %cst_132 : f32 to vector<8x64xf32>
    %336 = arith.mulf %335, %334 : vector<8x64xf32>
    %337 = arith.addf %332, %336 : vector<8x64xf32>
    %cst_133 = arith.constant 0.797884583 : f32
    %338 = vector.broadcast %cst_133 : f32 to vector<8x64xf32>
    %339 = arith.mulf %338, %337 : vector<8x64xf32>
    %340 = math.tanh %339 : vector<8x64xf32>
    %cst_134 = arith.constant 1.000000e+00 : f32
    %341 = vector.broadcast %cst_134 : f32 to vector<8x64xf32>
    %342 = arith.addf %341, %340 : vector<8x64xf32>
    %cst_135 = arith.constant 5.000000e-01 : f32
    %343 = vector.broadcast %cst_135 : f32 to vector<8x64xf32>
    %344 = arith.mulf %343, %342 : vector<8x64xf32>
    %345 = arith.mulf %332, %344 : vector<8x64xf32>
    %c1_136 = arith.constant 1 : index
    %c0_137 = arith.constant 0 : index
    %c0_138 = arith.constant 0 : index
    %346 = vector.load %arg11[%c1_136, %c0_137, %c0_138] : memref<2x64x32xbf16, #tpu.memory_space<vmem>>, vector<1x64x32xbf16>
    %347 = vector.shape_cast %346 : vector<1x64x32xbf16> to vector<64x32xbf16>
    %348 = arith.truncf %345 : vector<8x64xf32> to vector<8x64xbf16>
    %cst_139 = arith.constant dense<0.000000e+00> : vector<8x32xf32>
    %349 = tpu.matmul %348, %347, %cst_139 {dimension_numbers = #tpu.dot_dimension_numbers<[1], [0], [0], [1], [0, 0, 1, 1], [], []>} : vector<8x64xbf16>, vector<64x32xbf16>, vector<8x32xf32> -> vector<8x32xf32>
    %c1_140 = arith.constant 1 : index
    %c0_141 = arith.constant 0 : index
    %c0_142 = arith.constant 0 : index
    %350 = vector.load %arg12[%c1_140, %c0_141, %c0_142] : memref<2x1x32xf32, #tpu.memory_space<vmem>>, vector<1x1x32xf32>
    %351 = vector.shape_cast %350 : vector<1x1x32xf32> to vector<1x32xf32>
    %352 = vector.broadcast %351 : vector<1x32xf32> to vector<8x32xf32>
    %353 = arith.addf %349, %352 : vector<8x32xf32>
    %354 = arith.addf %324, %353 : vector<8x32xf32>
    %c1_143 = arith.constant 1 : index
    %c0_144 = arith.constant 0 : index
    %c0_145 = arith.constant 0 : index
    %355 = vector.load %arg15[%c1_143, %c0_144, %c0_145] : memref<2x1x32xf32, #tpu.memory_space<vmem>>, vector<1x1x32xf32>
    %356 = vector.shape_cast %355 : vector<1x1x32xf32> to vector<1x32xf32>
    %c1_146 = arith.constant 1 : index
    %c0_147 = arith.constant 0 : index
    %c0_148 = arith.constant 0 : index
    %357 = vector.load %arg16[%c1_146, %c0_147, %c0_148] : memref<2x1x32xf32, #tpu.memory_space<vmem>>, vector<1x1x32xf32>
    %358 = vector.shape_cast %357 : vector<1x1x32xf32> to vector<1x32xf32>
    %cst_149 = arith.constant dense<0.000000e+00> : vector<8xf32>
    %359 = vector.multi_reduction <add>, %354, %cst_149 [1] : vector<8x32xf32> to vector<8xf32>
    %360 = vector.shape_cast %359 : vector<8xf32> to vector<8x1xf32>
    %cst_150 = arith.constant 3.200000e+01 : f32
    %361 = vector.broadcast %cst_150 : f32 to vector<8x1xf32>
    %362 = arith.divf %360, %361 : vector<8x1xf32>
    %363 = vector.broadcast %362 : vector<8x1xf32> to vector<8x32xf32>
    %364 = arith.subf %354, %363 : vector<8x32xf32>
    %365 = arith.mulf %364, %364 : vector<8x32xf32>
    %cst_151 = arith.constant dense<0.000000e+00> : vector<8xf32>
    %366 = vector.multi_reduction <add>, %365, %cst_151 [1] : vector<8x32xf32> to vector<8xf32>
    %367 = vector.shape_cast %366 : vector<8xf32> to vector<8x1xf32>
    %cst_152 = arith.constant 3.200000e+01 : f32
    %368 = vector.broadcast %cst_152 : f32 to vector<8x1xf32>
    %369 = arith.divf %367, %368 : vector<8x1xf32>
    %cst_153 = arith.constant 9.99999974E-6 : f32
    %370 = vector.broadcast %cst_153 : f32 to vector<8x1xf32>
    %371 = arith.addf %369, %370 : vector<8x1xf32>
    %372 = math.rsqrt %371 : vector<8x1xf32>
    %373 = vector.broadcast %372 : vector<8x1xf32> to vector<8x32xf32>
    %374 = arith.mulf %364, %373 : vector<8x32xf32>
    %375 = vector.broadcast %356 : vector<1x32xf32> to vector<8x32xf32>
    %376 = arith.mulf %374, %375 : vector<8x32xf32>
    %377 = vector.broadcast %358 : vector<1x32xf32> to vector<8x32xf32>
    %378 = arith.addf %376, %377 : vector<8x32xf32>
    %379 = vector.extract_strided_slice %378 {offsets = [7, 0], sizes = [1, 32], strides = [1, 1]} : vector<8x32xf32> to vector<1x32xf32>
    %c0_154 = arith.constant 0 : index
    %c0_155 = arith.constant 0 : index
    %380 = vector.load %arg17[%c0_154, %c0_155] : memref<1x32xf32, #tpu.memory_space<vmem>>, vector<1x32xf32>
    %c0_156 = arith.constant 0 : index
    %c0_157 = arith.constant 0 : index
    %381 = vector.load %arg18[%c0_156, %c0_157] : memref<1x32xf32, #tpu.memory_space<vmem>>, vector<1x32xf32>
    %cst_158 = arith.constant dense<0.000000e+00> : vector<1xf32>
    %382 = vector.multi_reduction <add>, %379, %cst_158 [1] : vector<1x32xf32> to vector<1xf32>
    %383 = vector.shape_cast %382 : vector<1xf32> to vector<1x1xf32>
    %cst_159 = arith.constant 3.200000e+01 : f32
    %384 = vector.broadcast %cst_159 : f32 to vector<1x1xf32>
    %385 = arith.divf %383, %384 : vector<1x1xf32>
    %386 = vector.broadcast %385 : vector<1x1xf32> to vector<1x32xf32>
    %387 = arith.subf %379, %386 : vector<1x32xf32>
    %388 = arith.mulf %387, %387 : vector<1x32xf32>
    %cst_160 = arith.constant dense<0.000000e+00> : vector<1xf32>
    %389 = vector.multi_reduction <add>, %388, %cst_160 [1] : vector<1x32xf32> to vector<1xf32>
    %390 = vector.shape_cast %389 : vector<1xf32> to vector<1x1xf32>
    %cst_161 = arith.constant 3.200000e+01 : f32
    %391 = vector.broadcast %cst_161 : f32 to vector<1x1xf32>
    %392 = arith.divf %390, %391 : vector<1x1xf32>
    %cst_162 = arith.constant 9.99999974E-6 : f32
    %393 = vector.broadcast %cst_162 : f32 to vector<1x1xf32>
    %394 = arith.addf %392, %393 : vector<1x1xf32>
    %395 = math.rsqrt %394 : vector<1x1xf32>
    %396 = vector.broadcast %395 : vector<1x1xf32> to vector<1x32xf32>
    %397 = arith.mulf %387, %396 : vector<1x32xf32>
    %398 = arith.mulf %397, %380 : vector<1x32xf32>
    %399 = arith.addf %398, %381 : vector<1x32xf32>
    %c0_163 = arith.constant 0 : index
    %c0_164 = arith.constant 0 : index
    %400 = vector.load %arg19[%c0_163, %c0_164] : memref<32x128xbf16, #tpu.memory_space<vmem>>, vector<32x128xbf16>
    %401 = arith.truncf %399 : vector<1x32xf32> to vector<1x32xbf16>
    %cst_165 = arith.constant dense<0.000000e+00> : vector<1x128xf32>
    %402 = tpu.matmul %401, %400, %cst_165 {dimension_numbers = #tpu.dot_dimension_numbers<[1], [0], [0], [1], [0, 0, 1, 1], [], []>} : vector<1x32xbf16>, vector<32x128xbf16>, vector<1x128xf32> -> vector<1x128xf32>
    %c0_166 = arith.constant 0 : index
    %c0_167 = arith.constant 0 : index
    %c0_168 = arith.constant 0 : index
    %403 = vector.load %arg20[%c0_166, %c0_167, %c0_168] : memref<1x1x128xf32, #tpu.memory_space<vmem>>, vector<1x1x128xf32>
    %404 = vector.shape_cast %403 : vector<1x1x128xf32> to vector<1x128xf32>
    %405 = vector.shape_cast %402 : vector<1x128xf32> to vector<1x1x128xf32>
    tpu.vector_store %arg20[%c0_166, %c0_167, %c0_168], %405 {strides = array<i32>} : memref<1x1x128xf32, #tpu.memory_space<vmem>>, vector<1x1x128xf32>,
    return
  }
  func.func @transform_0(%arg0: i32) -> (i32, i32, i32) {
    %c0_i32 = arith.constant 0 : i32
    %c0_i32_0 = arith.constant 0 : i32
    %c0_i32_1 = arith.constant 0 : i32
    return %arg0, %c0_i32, %c0_i32_0 : i32, i32, i32
  }
  func.func @transform_1(%arg0: i32) -> (i32, i32, i32) {
    %c0_i32 = arith.constant 0 : i32
    %c0_i32_0 = arith.constant 0 : i32
    %c0_i32_1 = arith.constant 0 : i32
    return %arg0, %c0_i32, %c0_i32_0 : i32, i32, i32
  }
  func.func @transform_2(%arg0: i32) -> (i32, i32) {
    %c0_i32 = arith.constant 0 : i32
    %c0_i32_0 = arith.constant 0 : i32
    %c0_i32_1 = arith.constant 0 : i32
    return %c0_i32, %c0_i32_0 : i32, i32
  }
  func.func @transform_3(%arg0: i32) -> (i32, i32) {
    %c0_i32 = arith.constant 0 : i32
    %c0_i32_0 = arith.constant 0 : i32
    %c0_i32_1 = arith.constant 0 : i32
    return %c0_i32, %c0_i32_0 : i32, i32
  }
  func.func @transform_4(%arg0: i32) -> (i32, i32, i32) {
    %c0_i32 = arith.constant 0 : i32
    %c0_i32_0 = arith.constant 0 : i32
    %c0_i32_1 = arith.constant 0 : i32
    %c0_i32_2 = arith.constant 0 : i32
    return %c0_i32, %c0_i32_0, %c0_i32_1 : i32, i32, i32
  }
  func.func @transform_5(%arg0: i32) -> (i32, i32, i32) {
    %c0_i32 = arith.constant 0 : i32
    %c0_i32_0 = arith.constant 0 : i32
    %c0_i32_1 = arith.constant 0 : i32
    %c0_i32_2 = arith.constant 0 : i32
    return %c0_i32, %c0_i32_0, %c0_i32_1 : i32, i32, i32
  }
  func.func @transform_6(%arg0: i32) -> (i32, i32, i32) {
    %c0_i32 = arith.constant 0 : i32
    %c0_i32_0 = arith.constant 0 : i32
    %c0_i32_1 = arith.constant 0 : i32
    %c0_i32_2 = arith.constant 0 : i32
    return %c0_i32, %c0_i32_0, %c0_i32_1 : i32, i32, i32
  }
  func.func @transform_7(%arg0: i32) -> (i32, i32, i32) {
    %c0_i32 = arith.constant 0 : i32
    %c0_i32_0 = arith.constant 0 : i32
    %c0_i32_1 = arith.constant 0 : i32
    %c0_i32_2 = arith.constant 0 : i32
    return %c0_i32, %c0_i32_0, %c0_i32_1 : i32, i32, i32
  }
  func.func @transform_8(%arg0: i32) -> (i32, i32, i32) {
    %c0_i32 = arith.constant 0 : i32
    %c0_i32_0 = arith.constant 0 : i32
    %c0_i32_1 = arith.constant 0 : i32
    %c0_i32_2 = arith.constant 0 : i32
    return %c0_i32, %c0_i32_0, %c0_i32_1 : i32, i32, i32
  }
  func.func @transform_9(%arg0: i32) -> (i32, i32, i32) {
    %c0_i32 = arith.constant 0 : i32
    %c0_i32_0 = arith.constant 0 : i32
    %c0_i32_1 = arith.constant 0 : i32
    %c0_i32_2 = arith.constant 0 : i32
    return %c0_i32, %c0_i32_0, %c0_i32_1 : i32, i32, i32
  }
  func.func @transform_10(%arg0: i32) -> (i32, i32, i32) {
    %c0_i32 = arith.constant 0 : i32
    %c0_i32_0 = arith.constant 0 : i32
    %c0_i32_1 = arith.constant 0 : i32
    %c0_i32_2 = arith.constant 0 : i32
    return %c0_i32, %c0_i32_0, %c0_i32_1 : i32, i32, i32
  }
  func.func @transform_11(%arg0: i32) -> (i32, i32, i32) {
    %c0_i32 = arith.constant 0 : i32
    %c0_i32_0 = arith.constant 0 : i32
    %c0_i32_1 = arith.constant 0 : i32
    %c0_i32_2 = arith.constant 0 : i32
    return %c0_i32, %c0_i32_0, %c0_i32_1 : i32, i32, i32
  }
  func.func @transform_12(%arg0: i32) -> (i32, i32, i32) {
    %c0_i32 = arith.constant 0 : i32
    %c0_i32_0 = arith.constant 0 : i32
    %c0_i32_1 = arith.constant 0 : i32
    %c0_i32_2 = arith.constant 0 : i32
    return %c0_i32, %c0_i32_0, %c0_i32_1 : i32, i32, i32
  }
  func.func @transform_13(%arg0: i32) -> (i32, i32, i32) {
    %c0_i32 = arith.constant 0 : i32
    %c0_i32_0 = arith.constant 0 : i32
    %c0_i32_1 = arith.constant 0 : i32
    %c0_i32_2 = arith.constant 0 : i32
    return %c0_i32, %c0_i32_0, %c0_i32_1 : i32, i32, i32
  }
  func.func @transform_14(%arg0: i32) -> (i32, i32, i32) {
    %c0_i32 = arith.constant 0 : i32
    %c0_i32_0 = arith.constant 0 : i32
    %c0_i32_1 = arith.constant 0 : i32
    %c0_i32_2 = arith.constant 0 : i32
    return %c0_i32, %c0_i32_0, %c0_i32_1 : i32, i32, i32
  }
  func.func @transform_15(%arg0: i32) -> (i32, i32, i32) {
    %c0_i32 = arith.constant 0 : i32
    %c0_i32_0 = arith.constant 0 : i32
    %c0_i32_1 = arith.constant 0 : i32
    %c0_i32_2 = arith.constant 0 : i32
    return %c0_i32, %c0_i32_0, %c0_i32_1 : i32, i32, i32
  }
  func.func @transform_16(%arg0: i32) -> (i32, i32) {
    %c0_i32 = arith.constant 0 : i32
    %c0_i32_0 = arith.constant 0 : i32
    %c0_i32_1 = arith.constant 0 : i32
    return %c0_i32, %c0_i32_0 : i32, i32
  }
  func.func @transform_17(%arg0: i32) -> (i32, i32) {
    %c0_i32 = arith.constant 0 : i32
    %c0_i32_0 = arith.constant 0 : i32
    %c0_i32_1 = arith.constant 0 : i32
    return %c0_i32, %c0_i32_0 : i32, i32
  }
  func.func @transform_18(%arg0: i32) -> (i32, i32) {
    %c0_i32 = arith.constant 0 : i32
    %c0_i32_0 = arith.constant 0 : i32
    %c0_i32_1 = arith.constant 0 : i32
    return %c0_i32, %c0_i32_0 : i32, i32
  }
  func.func @transform_19(%arg0: i32) -> (i32, i32, i32) {
    %c0_i32 = arith.constant 0 : i32
    %c0_i32_0 = arith.constant 0 : i32
    %c0_i32_1 = arith.constant 0 : i32
    return %arg0, %c0_i32, %c0_i32_0 : i32, i32, i32
  }
}

</mosaic_0001>

<bundles_post_ra>
// kernel: model_forward.1
= control target key start
LH: loop header
LB: loop body
LE: loop exit
PB: predicated region body
PF: predicated region fallthrough
CT: control target
= control target key end

     0   :  { %s3905_s0 = inlined_call_operand.vmem [shape: f32[2,8,8], index: 0, kind: input, shape index: {}]   ;;  %s3906_s1 = inlined_call_operand.vmem [shape: f32[2,8,32], index: 1, kind: input, shape index: {}]   ;;  %s3907_s2 = inlined_call_operand.vmem [shape: bf16[8,32], index: 2, kind: input, shape index: {}]   ;;  %s3908_s3 = inlined_call_operand.vmem [shape: f32[1,32], index: 3, kind: input, shape index: {}]   ;;  %s3909_s4 = inlined_call_operand.vmem [shape: bf16[2,32,96], index: 4, kind: input, shape index: {}]   ;;  %s3910_s5 = inlined_call_operand.vmem [shape: f32[2,1,96], index: 5, kind: input, shape index: {}]   ;;  %s3911_s6 = inlined_call_operand.vmem [shape: bf16[2,32,32], index: 6, kind: input, shape index: {}]   ;;  %s3912_s7 = inlined_call_operand.vmem [shape: f32[2,1,32], index: 7, kind: input, shape index: {}]   ;;  %s3913_s8 = inlined_call_operand.vmem [shape: bf16[2,32,64], index: 8, kind: input, shape index: {}]   ;;  %s3914_s9 = inlined_call_operand.vmem [shape: f32[2,1,64], index: 9, kind: input, shape index: {}]   ;;  %s3915_s10 = inlined_call_operand.vmem [shape: bf16[2,64,32], index: 10, kind: input, shape index: {}]   ;;  %s3916_s11 = inlined_call_operand.vmem [shape: f32[2,1,32], index: 11, kind: input, shape index: {}]   ;;  %s3917_s12 = inlined_call_operand.vmem [shape: f32[2,1,32], index: 12, kind: input, shape index: {}]   ;;  %s3918_s13 = inlined_call_operand.vmem [shape: f32[2,1,32], index: 13, kind: input, shape index: {}]   ;;  %s3919_s14 = inlined_call_operand.vmem [shape: f32[2,1,32], index: 14, kind: input, shape index: {}]   ;;  %s3920_s15 = inlined_call_operand.vmem [shape: f32[2,1,32], index: 15, kind: input, shape index: {}]   ;;  %s3921_s16 = inlined_call_operand.vmem [shape: f32[1,32], index: 16, kind: input, shape index: {}]   ;;  %s3922_s17 = inlined_call_operand.vmem [shape: f32[1,32], index: 17, kind: input, shape index: {}]   ;;  %s3923_s18 = inlined_call_operand.vmem [shape: bf16[32,128], index: 18, kind: input, shape index: {}]   ;;  %s3924_s19 = inlined_call_operand.hbm [shape: f32[2,1,128], index: 19, kind: output, shape index: {}]  }
   0x1   :  { %3937 = sst [smem:[#allocation11_spill]] %s3905_s0 }
   0x2   :  { %3938 = sst [smem:[#allocation12_spill]] %s3906_s1 }
   0x3   :  { %3939 = sst [smem:[#allocation13_spill]] %s3907_s2 }
   0x4   :  { %3940 = sst [smem:[#allocation14_spill]] %s3908_s3 }
   0x5   :  { %24 = vsyncpa [#allocation3], 0 }
   0x6   :  { %26 = vsyncpa [#allocation3 + $0x1], 0  ;;  %s3410_s0 = smov 0   ;;  %s3412_s30 = smov 0  }
   0x7   :  { %s3414_s20 = smov 0   ;;  %s3416_s21 = smov 0  }
   0x8 LB: > { %3941 = sst [smem:[#allocation5_spill]] %s3282_s0  ;;  %s3431_s1 = sadd.s32 4294967295, %s3294_s21   ;;  %s3294_s21 = sphi %s3416_s21, %s3962_s21   ;;  %s3290_s20 = sphi %s3414_s20, %s3964_s20   ;;  %s3286_s30 = sphi %s3412_s30, %s3966_s30   ;;  %s3282_s0 = sphi %s3410_s0, %s3965_s0  }
   0x9   : > { %3942 = sst [smem:[#allocation6_spill]] %s3290_s20  ;;  %s2721_s22 = sadd.s32 4294967294, %s3294_s21  }
   0xa   : > { %3943 = sst [smem:[#allocation7_spill]] %s3294_s21  ;;  %s3435_s2 = sadd.s32 1, %s3294_s21  }
   0xb   : > { %3944 = sst [smem:[#allocation8_spill]] %s3435_s2  ;;  %s448_s23 = sadd.s32 1, %s3290_s20 }
   0xc   : > { %s445_s24 = ssub.s32 %s3294_s21, %s3435_s2  ;;  %p458_p0 = scmp.ne.s32.totalorder %s3290_s20, %s3286_s30 }
   0xd   : > { %p446_p1 = scmp.eq.s32.totalorder %s445_s24, 0  ;;  %p459_p2 = scmp.eq.s32.totalorder %s3431_s1, 1 }
   0xe   : > { %p464_p3 = scmp.ne.s32.totalorder %s3286_s30, %s3282_s0  ;;  %p465_p4 = scmp.eq.s32.totalorder %s2721_s22, 1 }
   0xf   : > { %s3446_s25 = scalar_select %p446_p1, %s3290_s20, %s448_s23  }
  0x10   : > { %p3448_p5 = por %p459_p2, %p458_p0  ;;  %p3452_p6 = por %p465_p4, %p464_p3 }
  0x11   : > { %3945 = sst [smem:[#allocation9_spill]] %s3446_s25  ;;  %p2724_p7 = scmp.ge.s32.totalorder %s3294_s21, 1 }
  0x12   : > { %s3947_s26 = scalar_select %p3452_p6, 1, 0 }
  0x13   : > { %p548_p8 = scmp.lt.s32.totalorder %s3294_s21, 3 }
  0x14   : > { %3948 = sst [smem:[#allocation10_spill]] %s3947_s26 }
  0x15   : > { %p549_p9 = pnand %p2724_p7, %p548_p8 }
  0x16   : > { %s3949_s29 = sld [smem:[#allocation13_spill]] (!%p549_p9)  ;;  %vm630_vm0 = vcmask (!%p549_p9), 1043456   ;;  %p606_p10 = scmp.lt.s32.totalorder (!%p549_p9), %s3431_s1, 1  ;;  %v3296_v1 = vmov (!%p549_p9), 0.0   ;;  %vm3297_vm1 = vmmov (!%p549_p9), 0   ;;  %vm626_vm2 = vcmask (!%p549_p9), 64512  }
  0x17   : > { %552 = sbr.rel (%p549_p9) target bundleno = 8164 (0x1fe4), region = 96  ;;  %2902 = vmatprep.subr.bf16.mxu0 (!%p549_p9), %v3296_v1  ;;  %2904 = vmatprep.mubr.msk.bf16.mxu0 (!%p549_p9), %vm3297_vm1, %v3296_v1  ;;  %s3950_s28 = sld [smem:[#allocation11_spill]] (!%p549_p9)  ;;  %v3168_v5 = vld [vmem:[%s3909_s4] sm:$0xff] (!%p549_p9)   ;;  %v3169_v6 = vld [vmem:[%s3909_s4 + $0x8] sm:$0xff] (!%p549_p9)   ;;  %vm699_vm3 = vcmask (!%p549_p9), 261120   ;;  %vm1532_vm4 = vcmask (!%p549_p9), 523264  }
  0x18   : > { %2908 = vmatprep.subr.bf16.mxu1 (!%p549_p9), %v3296_v1  ;;  %2912 = vmatprep.mubr.msk.bf16.mxu1 (!%p549_p9), %vm3297_vm1, %v3296_v1  ;;  %s3952_s21 = sld [smem:[#allocation14_spill]] (!%p549_p9)  ;;  %v2729_v16 = vld [vmem:[%s3910_s5] ss:$0 sm:$0xff] (!%p549_p9)  ;;  %s3299_s2 = smov (!%p549_p9), 96   ;;  %v744_v62 = vld [vmem:[%s3911_s6 + $0x4] sm:$0xf] (!%p549_p9) }
  0x19   : > { %2909 = vmatpush3.bf16.msra.mxu1 (!%p549_p9), %v3168_v5  ;;  %s3300_s25 = smov (!%p549_p9), 88   ;;  %s3936_s26 = smov (!%p549_p9), 64   ;;  %v743_v60 = vld [vmem:[%s3911_s6] sm:$0xf] (!%p549_p9)  ;;  %v973_v63 = vsel (!%p549_p9), %vm630_vm0, %v744_v62, 0  ;;  %vm2548_vm5 = vcmask (!%p549_p9), 261127  }
  0x1a   : > { %2910 = vmatprep.subr.bf16.mxu1 (!%p549_p9), %v3296_v1  ;;  %s3935_s24 = smov (!%p549_p9), 80   ;;  %v1019_v61 = vsel (!%p549_p9), %vm630_vm0, %v743_v60, 0  ;;  %s3932_s0 = smov (!%p549_p9), 72  }
  0x1b   : > { %s3933_s27 = smov (!%p549_p9), 104  }
  0x1c   : > { %v617_v0 = vld [vmem:[%s3949_s29] sm:$0xf] (!%p549_p9) }
  0x1d   : > { %v632_v2 = vsel (!%p549_p9), %vm630_vm0, %v617_v0, 0  ;;  %2911 = vmatpush3.bf16.msra.mxu1 (!%p549_p9), %v3169_v6 }
  0x1e   : > { %2903 = vmatpush3.bf16.msra.mxu0 %v632_v2  ;;  %s607_s22 = scalar_select %p606_p10, %s3431_s1, 1  ;;  %2922 = vmatprep.subr.bf16.mxu1 %v3296_v1  ;;  %v2727_v7 = vld [vmem:[%s3952_s21] ss:$0 sm:$0xff] }
  0x1f   : > { %2916 = vmatprep.subr.bf16.mxu0 %v3296_v1  ;;  %s3298_s21 = smov 120  }
  0x20   : > { %s2725_s23 = sshll.u32 %s607_s22, 3  ;;  %s3303_s22 = smov 112  }
  0x21   : > { %s609_s29 = scalar_lea.vmem %s3950_s28, %s2725_s23  ;;  %s3951_s28 = sld [smem:[#allocation12_spill]] }
  0x22   : > { %v615_v3 = vld [vmem:[%s609_s29] sm:$0xff] }
  0x23   : > { %v618_v4 = vpack.c.bf16 %v615_v3, %v615_v3 }
  0x25   : > { %2905 = vmatmul.mubr.msk.bf16.vlgmr.msra.gmra.mrb[0].mxu0 %vm626_vm2, %v618_v4 }
  0x26   : > { %2918 = vmatprep.mubr.msk.bf16.mxu0 %vm3297_vm1, %v3296_v1 }
  0x27   : > { %s613_s29 = scalar_lea.vmem %s3951_s28, %s2725_s23  ;;  %s3302_s23 = smov 56  }
  0x28   : > { %v616_v8 = vld [vmem:[%s613_s29] sm:$0xff]  ;;  %s3934_s28 = smov 48   ;;  %s3931_s29 = smov 40  }
  0xf8   : > { %v668_v9 = vpop.f32.mrb[0].mxu0 }
  0xf9   : > { %v669_v10 = vadd.f32 %v2727_v7, %v668_v9  ;;  %v2906_v11 = vpop.f32.mrb[1].mxu0 }
  0xfa   : > { %v671_v12 = vpop.f32.mrb[2].mxu0 }
  0xfb   : > { %v3491_v13 = vadd.f32 %v669_v10, %v616_v8  ;;  %v2907_v14 = vpop.f32.mrb[3].mxu0 }
  0xfd   : > { %v679_v15 = vpack.c.bf16 %v3491_v13, %v3491_v13 }
  0xff   : > { %2913 = vmatmul.mubr.msk.bf16.vlgmr.msra.gmra.mrb[0].mxu1 %vm699_vm3, %v679_v15 }
 0x100   : > { %2924 = vmatprep.mubr.msk.bf16.mxu1 %vm3297_vm1, %v3296_v1 }
 0x1d2   : > { %v737_v17 = vpop.f32.mrb[0].mxu1 }
 0x1d3   : > { %v738_v18 = vadd.f32 %v2729_v16, %v737_v17  ;;  %v2914_v19 = vpop.f32.mrb[1].mxu1 }
 0x1d4   : > { %v740_v20 = vpop.f32.mrb[2].mxu1 }
 0x1d5   : > { %v3501_v21 = vpack.c.bf16 %v738_v18, %v738_v18  ;;  %v2915_v22 = vpop.f32.mrb[3].mxu1 }
 0x1d7   : > { %858 = vrot.lane.b32.xlu1 %v3501_v21, %s3298_s21  ;;  %749 = vrot.lane.b32.xlu0 %v3501_v21, %s3299_s2 }
 0x1db   : > { %860 = vrot.lane.b32.xlu0 %v3501_v21, %s3300_s25 }
 0x249   : > { %v750_v23 = vpop.permute.xlu0 %749  ;;  %v859_v27 = vpop.permute.xlu1 %858 }
 0x24a   : > { %v755_v24 = vsel %vm626_vm2, %v750_v23, 0 }
 0x24b   : > { %2917 = vmatpush3.bf16.xpose.msra.mxu0 %v755_v24 }
 0x24c   : > { %2928 = vmatprep.subr.bf16.mxu0 %v3296_v1 }
 0x24d   : > { %v861_v25 = vpop.permute.xlu0 %860 }
 0x24e   : > { %v866_v26 = vsel %vm626_vm2, %v861_v25, 0 }
 0x252   : > { %2919 = vmatmul.mubr.msk.bf16.vlgmr.msra.gmra.mrb[4].mxu0 %vm626_vm2, %v3501_v21 }
 0x253   : > { %2929 = vmatpush3.bf16.xpose.msra.mxu0 %v866_v26  ;;  %2930 = vmatprep.mubr.msk.bf16.mxu0 %vm3297_vm1, %v3296_v1 }
 0x254   : > { %2940 = vmatprep.subr.bf16.mxu0 %v3296_v1 }
 0x25a   : > { %2931 = vmatmul.mubr.msk.bf16.vlgmr.msra.gmra.mrb[8].mxu0 %vm626_vm2, %v859_v27 }
 0x25b   : > { %2942 = vmatprep.mubr.msk.bf16.mxu0 %vm3297_vm1, %v3296_v1  ;;  %2941 = vmatpush3.bf16.msra.mxu0 %v973_v63 }
 0x25c   : > { %2952 = vmatprep.subr.bf16.mxu0 %v3296_v1 }
 0x325   : > { %v791_v28 = vpop.f32.mrb[4].mxu0 }
 0x326   : > { %v2920_v29 = vpop.f32.mrb[5].mxu0  ;;  %v797_v30 = vsel %vm626_vm2, %v791_v28, -inf }
 0x327   : > { %798 = vmax.xlane.f32.xlu1 %v797_v30  ;;  %v794_v31 = vpop.f32.mrb[6].mxu0 }
 0x328   : > { %v2921_v32 = vpop.f32.mrb[7].mxu0 }
 0x32d   : > { %v902_v33 = vpop.f32.mrb[8].mxu0 }
 0x32e   : > { %v2932_v34 = vpop.f32.mrb[9].mxu0  ;;  %v908_v35 = vsel %vm626_vm2, %v902_v33, -inf }
 0x32f   : > { %909 = vmax.xlane.f32.xlu0 %v908_v35  ;;  %v905_v36 = vpop.f32.mrb[10].mxu0 }
 0x330   : > { %v2933_v37 = vpop.f32.mrb[11].mxu0 }
 0x3b4   : > { %v799_v38 = vpop.xlane.xlu1 %798 }
 0x3b5   : > { %v800_v39 = vsub.f32 %v791_v28, %v799_v38 }
 0x3b7   : > { %v801_v40 = vmul.f32 1.442695, %v800_v39 }
 0x3b9   : > { %3186 = vpow2.f32 %v801_v40 }
 0x3bc   : > { %v910_v41 = vpop.xlane.xlu0 %909 }
 0x3bd   : > { %v911_v42 = vsub.f32 %v902_v33, %v910_v41 }
 0x3bf   : > { %v912_v43 = vmul.f32 1.442695, %v911_v42 }
 0x3c1   : > { %3188 = vpow2.f32 %v912_v43 }
 0x3c3   : > { %v3187_v44 = vpop.eup %3186 }
 0x3c4   : > { %v803_v45 = vsel %vm626_vm2, %v3187_v44, 0.0 }
 0x3c5   : > { %804 = vadd.xlane.f32.xlu0 %v803_v45 }
 0x3cb   : > { %v3189_v46 = vpop.eup %3188 }
 0x3cc   : > { %v914_v47 = vsel %vm626_vm2, %v3189_v46, 0.0 }
 0x3cd   : > { %915 = vadd.xlane.f32.xlu1 %v914_v47 }
 0x3db   : > { %809 = vrot.lane.b32.xlu0 %v3501_v21, %s3936_s26  ;;  %s3956_s26 = smov 104  }
 0x3de   : > { %920 = vrot.lane.b32.xlu1 %v3501_v21, %s3302_s23 }
 0x3df   : > { %1061 = vrot.lane.b32.xlu0 %v3501_v21, %s3303_s22 }
 0x3e2   : > { %1063 = vrot.lane.b32.xlu1 %v3501_v21, %s3935_s24  ;;  %s3955_s24 = smov 48  }
 0x452   : > { %v805_v48 = vpop.xlane.xlu0 %804 }
 0x453   : > { %3190 = vrcp.f32 %v805_v48 }
 0x456   : > { %v810_v49 = vpop.permute.xlu0 %809 }
 0x457   : > { %v815_v50 = vsel %vm630_vm0, %v810_v49, 0 }
 0x458   : > { %2923 = vmatpush3.bf16.msra.mxu1 %v815_v50 }
 0x459   : > { %2934 = vmatprep.subr.bf16.mxu1 %v3296_v1 }
 0x45a   : > { %v916_v51 = vpop.xlane.xlu1 %915  ;;  %v1062_v14 = vpop.permute.xlu0 %1061 }
 0x45b   : > { %3192 = vrcp.f32 %v916_v51 }
 0x45d   : > { %v3191_v52 = vpop.eup %3190 }
 0x45e   : > { %v807_v53 = vmul.f32 %v3191_v52, %v3187_v44  ;;  %v921_v54 = vpop.permute.xlu1 %920  ;;  %v745_v44 = vld [vmem:[%s3911_s6 + $0x8] sm:$0xf] }
 0x45f   : > { %v926_v56 = vsel %vm630_vm0, %v921_v54, 0  ;;  %v1176_v45 = vsel %vm630_vm0, %v745_v44, 0  ;;  %v3174_v44 = vld [vmem:[%s3915_s10 + $0x10] sm:$0xff]  }
 0x460   : > { %v808_v55 = vpack.c.bf16 %v807_v53, %v807_v53 }
 0x462   : > { %2925 = vmatmul.mubr.msk.bf16.vlgmr.msra.gmra.mrb[4].mxu1 %vm626_vm2, %v808_v55  ;;  %v1064_v6 = vpop.permute.xlu1 %1063 }
 0x463   : > { %2935 = vmatpush3.bf16.msra.mxu1 %v926_v56  ;;  %2936 = vmatprep.mubr.msk.bf16.mxu1 %vm3297_vm1, %v3296_v1  ;;  %v1069_v11 = vsel %vm626_vm2, %v1064_v6, 0 }
 0x464   : > { %2946 = vmatprep.subr.bf16.mxu1 %v3296_v1 }
 0x465   : > { %v3193_v57 = vpop.eup %3192 }
 0x466   : > { %v918_v58 = vmul.f32 %v3193_v57, %v3189_v46 }
 0x468   : > { %v919_v59 = vpack.c.bf16 %v918_v58, %v918_v58 }
 0x46a   : > { %2937 = vmatmul.mubr.msk.bf16.vlgmr.msra.gmra.mrb[8].mxu1 %vm626_vm2, %v919_v59 }
 0x46b   : > { %2948 = vmatprep.mubr.msk.bf16.mxu1 %vm3297_vm1, %v3296_v1  ;;  %2947 = vmatpush3.bf16.msra.mxu1 %v1019_v61 }
 0x46c   : > { %2958 = vmatprep.subr.bf16.mxu1 %v3296_v1 }
 0x535   : > { %v851_v0 = vpop.f32.mrb[4].mxu1 }
 0x536   : > { %v857_v2 = vpack.c.bf16 %v851_v0, %v851_v0  ;;  %v2926_v3 = vpop.f32.mrb[5].mxu1 }
 0x537   : > { %v854_v4 = vpop.f32.mrb[6].mxu1 }
 0x538   : > { %v2927_v5 = vpop.f32.mrb[7].mxu1  ;;  %2949 = vmatmul.mubr.msk.bf16.vlgmr.msra.gmra.mrb[12].mxu1 %vm626_vm2, %v857_v2 }
 0x539   : > { %2960 = vmatprep.mubr.msk.bf16.mxu1 %vm3297_vm1, %v3296_v1 }
 0x53d   : > { %v962_v7 = vpop.f32.mrb[8].mxu1 }
 0x53e   : > { %v968_v8 = vpack.c.bf16 %v962_v7, %v962_v7  ;;  %v2938_v9 = vpop.f32.mrb[9].mxu1 }
 0x53f   : > { %v965_v10 = vpop.f32.mrb[10].mxu1 }
 0x540   : > { %v2939_v12 = vpop.f32.mrb[11].mxu1  ;;  %2943 = vmatmul.mubr.msk.bf16.vlgmr.msra.gmra.mrb[12].mxu0 %vm626_vm2, %v968_v8  ;;  %v746_v8 = vld [vmem:[%s3911_s6 + $0xc] sm:$0xf] }
 0x541   : > { %2953 = vmatpush3.bf16.xpose.msra.mxu0 %v1069_v11  ;;  %2954 = vmatprep.mubr.msk.bf16.mxu0 %vm3297_vm1, %v3296_v1  ;;  %v1334_v9 = vsel %vm630_vm0, %v746_v8, 0 }
 0x542   : > { %2964 = vmatprep.subr.bf16.mxu0 %v3296_v1 }
 0x548   : > { %2955 = vmatmul.mubr.msk.bf16.vlgmr.msra.gmra.mrb[16].mxu0 %vm626_vm2, %v1062_v14 }
 0x549   : > { %2966 = vmatprep.mubr.msk.bf16.mxu0 %vm3297_vm1, %v3296_v1  ;;  %2965 = vmatpush3.bf16.msra.mxu0 %v1176_v45  ;;  %v3175_v45 = vld [vmem:[%s3915_s10 + $0x18] sm:$0xff]  }
 0x54a   : > { %2976 = vmatprep.subr.bf16.mxu0 %v3296_v1 }
 0x60b   : > { %v1055_v15 = vpop.f32.mrb[12].mxu1 }
 0x60c   : > { %v2950_v16 = vpop.f32.mrb[13].mxu1 }
 0x60d   : > { %v1058_v17 = vpop.f32.mrb[14].mxu1 }
 0x60e   : > { %v2951_v18 = vpop.f32.mrb[15].mxu1 }
 0x613   : > { %v1009_v19 = vpop.f32.mrb[12].mxu0 }
 0x614   : > { %v3563_v20 = vadd.f32 %v1055_v15, %v1009_v19  ;;  %v2944_v22 = vpop.f32.mrb[13].mxu0 }
 0x615   : > { %v1012_v23 = vpop.f32.mrb[14].mxu0 }
 0x616   : > { %v2945_v24 = vpop.f32.mrb[15].mxu0 }
 0x61b   : > { %v1105_v25 = vpop.f32.mrb[16].mxu0 }
 0x61c   : > { %v2956_v26 = vpop.f32.mrb[17].mxu0  ;;  %v1111_v27 = vsel %vm626_vm2, %v1105_v25, -inf }
 0x61d   : > { %1112 = vmax.xlane.f32.xlu1 %v1111_v27  ;;  %v1108_v28 = vpop.f32.mrb[18].mxu0 }
 0x61e   : > { %v2957_v29 = vpop.f32.mrb[19].mxu0 }
 0x62e   : > { %1221 = vrot.lane.b32.xlu1 %v3501_v21, %s3932_s0 }
 0x632   : > { %1219 = vrot.lane.b32.xlu1 %v3501_v21, %s3933_s27 }
 0x6aa   : > { %v1113_v30 = vpop.xlane.xlu1 %1112 }
 0x6ab   : > { %v1114_v31 = vsub.f32 %v1105_v25, %v1113_v30 }
 0x6ad   : > { %v1115_v32 = vmul.f32 1.442695, %v1114_v31  ;;  %v3170_v31 = vld [vmem:[%s3913_s8] sm:$0xff]  }
 0x6ae   : > { %v1222_v40 = vpop.permute.xlu1 %1221 }
 0x6af   : > { %3194 = vpow2.f32 %v1115_v32  ;;  %v1227_v42 = vsel %vm626_vm2, %v1222_v40, 0 }
 0x6b2   : > { %v1220_v43 = vpop.permute.xlu1 %1219 }
 0x6b9   : > { %v3195_v33 = vpop.eup %3194 }
 0x6ba   : > { %v1117_v34 = vsel %vm626_vm2, %v3195_v33, 0.0 }
 0x6bb   : > { %1118 = vadd.xlane.f32.xlu0 %v1117_v34 }
 0x6d1   : > { %1123 = vrot.lane.b32.xlu0 %v3501_v21, %s3934_s28  ;;  %s3957_s28 = smov 72  }
 0x748   : > { %v1119_v35 = vpop.xlane.xlu0 %1118 }
 0x749   : > { %3196 = vrcp.f32 %v1119_v35 }
 0x74c   : > { %v1124_v36 = vpop.permute.xlu0 %1123 }
 0x74d   : > { %v1129_v37 = vsel %vm630_vm0, %v1124_v36, 0  ;;  %v2746_v36 = vld [vmem:[%s3917_s12] ss:$0 sm:$0xff] }
 0x74e   : > { %2959 = vmatpush3.bf16.msra.mxu1 %v1129_v37 }
 0x74f   : > { %2970 = vmatprep.subr.bf16.mxu1 %v3296_v1 }
 0x753   : > { %v3197_v38 = vpop.eup %3196 }
 0x754   : > { %v1121_v39 = vmul.f32 %v3197_v38, %v3195_v33  ;;  %v2747_v38 = vld [vmem:[%s3918_s13] ss:$0 sm:$0xff] }
 0x756   : > { %v1122_v41 = vpack.c.bf16 %v1121_v39, %v1121_v39 }
 0x758   : > { %2961 = vmatmul.mubr.msk.bf16.vlgmr.msra.gmra.mrb[16].mxu1 %vm626_vm2, %v1122_v41 }
 0x759   : > { %2971 = vmatpush3.bf16.xpose.msra.mxu1 %v1227_v42  ;;  %2972 = vmatprep.mubr.msk.bf16.mxu1 %vm3297_vm1, %v3296_v1  ;;  %v3172_v42 = vld [vmem:[%s3915_s10] sm:$0xff]  }
 0x75a   : > { %2982 = vmatprep.subr.bf16.mxu1 %v3296_v1 }
 0x760   : > { %2973 = vmatmul.mubr.msk.bf16.vlgmr.msra.gmra.mrb[20].mxu1 %vm626_vm2, %v1220_v43  ;;  %v3173_v43 = vld [vmem:[%s3915_s10 + $0x8] sm:$0xff]  }
 0x761   : > { %2984 = vmatprep.mubr.msk.bf16.mxu1 %vm3297_vm1, %v3296_v1  ;;  %2983 = vmatpush3.bf16.msra.mxu1 %v1334_v9 }
 0x762   : > { %2996 = vmatprep.subr.bf16.mxu1 %v3296_v1 }
 0x82b   : > { %v1165_v46 = vpop.f32.mrb[16].mxu1 }
 0x82c   : > { %v1171_v47 = vpack.c.bf16 %v1165_v46, %v1165_v46  ;;  %v2962_v48 = vpop.f32.mrb[17].mxu1  ;;  %v2748_v46 = vld [vmem:[%s3914_s9] ss:$0 sm:$0xff] }
 0x82d   : > { %v1168_v49 = vpop.f32.mrb[18].mxu1 }
 0x82e   : > { %v2963_v50 = vpop.f32.mrb[19].mxu1  ;;  %2967 = vmatmul.mubr.msk.bf16.vlgmr.msra.gmra.mrb[20].mxu0 %vm626_vm2, %v1171_v47 }
 0x82f   : > { %2978 = vmatprep.mubr.msk.bf16.mxu0 %vm3297_vm1, %v3296_v1 }
 0x833   : > { %v1263_v51 = vpop.f32.mrb[20].mxu1 }
 0x834   : > { %v2974_v52 = vpop.f32.mrb[21].mxu1  ;;  %v1269_v53 = vsel %vm626_vm2, %v1263_v51, -inf }
 0x835   : > { %1270 = vmax.xlane.f32.xlu0 %v1269_v53  ;;  %v1266_v54 = vpop.f32.mrb[22].mxu1 }
 0x836   : > { %v2975_v55 = vpop.f32.mrb[23].mxu1 }
 0x84b   : > { %1281 = vrot.lane.b32.xlu0 %v3501_v21, %s3931_s29  ;;  %s3958_s29 = smov 40  }
 0x8c2   : > { %v1271_v56 = vpop.xlane.xlu0 %1270 }
 0x8c3   : > { %v1272_v57 = vsub.f32 %v1263_v51, %v1271_v56 }
 0x8c5   : > { %v1273_v58 = vmul.f32 1.442695, %v1272_v57 }
 0x8c6   : > { %v1282_v59 = vpop.permute.xlu0 %1281 }
 0x8c7   : > { %3198 = vpow2.f32 %v1273_v58  ;;  %v1287_v60 = vsel %vm630_vm0, %v1282_v59, 0 }
 0x8c8   : > { %2977 = vmatpush3.bf16.msra.mxu0 %v1287_v60 }
 0x8c9   : > { %2988 = vmatprep.subr.bf16.mxu0 %v3296_v1 }
 0x8d1   : > { %v3199_v61 = vpop.eup %3198 }
 0x8d2   : > { %v1275_v62 = vsel %vm626_vm2, %v3199_v61, 0.0 }
 0x8d3   : > { %1276 = vadd.xlane.f32.xlu1 %v1275_v62  ;;  %v2752_v62 = vld [vmem:[%s3916_s11] ss:$0 sm:$0xff] }
 0x901   : > { %v1212_v63 = vpop.f32.mrb[20].mxu0 }
 0x902   : > { %v1218_v0 = vadd.f32 %v1212_v63, %v3563_v20  ;;  %v2968_v2 = vpop.f32.mrb[21].mxu0  ;;  %v2745_v20 = vld [vmem:[%s3912_s7] ss:$0 sm:$0xff] }
 0x903   : > { %v1215_v3 = vpop.f32.mrb[22].mxu0 }
 0x904   : > { %v2969_v21 = vpop.f32.mrb[23].mxu0 }
 0x960   : > { %v1277_v4 = vpop.xlane.xlu1 %1276 }
 0x961   : > { %3200 = vrcp.f32 %v1277_v4 }
 0x96b   : > { %v3201_v5 = vpop.eup %3200 }
 0x96c   : > { %v1279_v6 = vmul.f32 %v3201_v5, %v3199_v61 }
 0x96e   : > { %v1280_v7 = vpack.c.bf16 %v1279_v6, %v1279_v6 }
 0x970   : > { %2979 = vmatmul.mubr.msk.bf16.vlgmr.msra.gmra.mrb[24].mxu0 %vm626_vm2, %v1280_v7 }
 0x971   : > { %2992 = vmatprep.mubr.msk.bf16.mxu0 %vm3297_vm1, %v3296_v1  ;;  %2989 = vmatpush3.bf16.msra.mxu0 %v3170_v31 }
 0x972   : > { %2990 = vmatprep.subr.bf16.mxu0 %v3296_v1 }
 0xa43   : > { %v1323_v10 = vpop.f32.mrb[24].mxu0 }
 0xa44   : > { %v1329_v11 = vpack.c.bf16 %v1323_v10, %v1323_v10  ;;  %v2980_v12 = vpop.f32.mrb[25].mxu0 }
 0xa45   : > { %v1326_v14 = vpop.f32.mrb[26].mxu0  ;;  %v3177_v12 = vld [vmem:[%s3909_s4 + $0x18] sm:$0xff]  }
 0xa46   : > { %v2981_v15 = vpop.f32.mrb[27].mxu0  ;;  %2985 = vmatmul.mubr.msk.bf16.vlgmr.msra.gmra.mrb[24].mxu1 %vm626_vm2, %v1329_v11  ;;  %v3176_v11 = vld [vmem:[%s3909_s4 + $0x10] sm:$0xff]  }
 0xa47   : > { %3004 = vmatprep.mubr.msk.bf16.mxu1 %vm3297_vm1, %v3296_v1  ;;  %2997 = vmatpush3.bf16.msra.mxu1 %v3172_v42 }
 0xa48   : > { %2998 = vmatprep.subr.bf16.mxu1 %v3296_v1 }
 0xa4b   : > { %2999 = vmatpush3.bf16.msra.mxu1 %v3173_v43 }
 0xa4c   : > { %3000 = vmatprep.subr.bf16.mxu1 %v3296_v1 }
 0xa4f   : > { %3001 = vmatpush3.bf16.msra.mxu1 %v3174_v44 }
 0xa50   : > { %3002 = vmatprep.subr.bf16.mxu1 %v3296_v1 }
 0xa53   : > { %3003 = vmatpush3.bf16.msra.mxu1 %v3175_v45 }
 0xa54   : > { %3022 = vmatprep.subr.bf16.mxu1 %v3296_v1 }
 0xb19   : > { %v1370_v16 = vpop.f32.mrb[24].mxu1 }
 0xb1a   : > { %v1376_v17 = vadd.f32 %v1370_v16, %v1218_v0  ;;  %v2986_v18 = vpop.f32.mrb[25].mxu1 }
 0xb1b   : > { %v1373_v19 = vpop.f32.mrb[26].mxu1  ;;  %v2758_v18 = vld [vmem:[%s3919_s14] ss:$0 sm:$0xff] }
 0xb1c   : > { %v1377_v22 = vadd.f32 %v1376_v17, %v3491_v13  ;;  %v2987_v23 = vpop.f32.mrb[27].mxu1  ;;  %v3171_v13 = vld [vmem:[%s3913_s8 + $0x8] sm:$0xff]  }
 0xb1d   : > { %2991 = vmatpush3.bf16.msra.mxu0 %v3171_v13 }
 0xb1e   : > { %v1385_v24 = vadd.f32 %v2745_v20, %v1377_v22  ;;  %3008 = vmatprep.subr.bf16.mxu0 %v3296_v1  ;;  %v2759_v20 = vld [vmem:[%s3920_s15] ss:$0 sm:$0xff] }
 0xb20   : > { %v1388_v25 = vsel %vm699_vm3, %v1385_v24, 0.0 }
 0xb21   : > { %1389 = vadd.xlane.f32.xlu1 %v1388_v25  ;;  %v2765_v25 = vld [vmem:[%s3910_s5 + $0x1] ss:$0 sm:$0xff] }
 0xbae   : > { %v1390_v26 = vpop.xlane.xlu1 %1389 }
 0xbaf   : > { %v1392_v27 = vmul.f32 0.03125, %v1390_v26 }
 0xbb1   : > { %v1393_v28 = vsub.f32 %v1385_v24, %v1392_v27 }
 0xbb3   : > { %v1394_v29 = vmul.f32 %v1393_v28, %v1393_v28 }
 0xbb5   : > { %v1395_v30 = vsel %vm699_vm3, %v1394_v29, 0.0 }
 0xbb6   : > { %1396 = vadd.xlane.f32.xlu1 %v1395_v30 }
 0xc43   : > { %v1397_v32 = vpop.xlane.xlu1 %1396 }
 0xc44   : > { %v1398_v33 = vmul.f32 0.03125, %v1397_v32 }
 0xc46   : > { %v1399_v34 = vadd.f32 1e-05, %v1398_v33 }
 0xc48   : > { %3202 = vrsqrt.f32 %v1399_v34 }
 0xc52   : > { %v3203_v35 = vpop.eup %3202 }
 0xc53   : > { %v1401_v37 = vmul.f32 %v3203_v35, %v1393_v28 }
 0xc55   : > { %v1408_v39 = vmul.f32 %v2746_v36, %v1401_v37 }
 0xc57   : > { %v1415_v40 = vadd.f32 %v2747_v38, %v1408_v39 }
 0xc59   : > { %v1420_v41 = vpack.c.bf16 %v1415_v40, %v1415_v40 }
 0xc5b   : > { %2993 = vmatmul.mubr.msk.bf16.vlgmr.msra.gmra.mrb[28].mxu0 %vm699_vm3, %v1420_v41 }
 0xc5c   : > { %3012 = vmatprep.mubr.msk.bf16.mxu0 %vm3297_vm1, %v3296_v1  ;;  %3009 = vmatpush3.bf16.msra.mxu0 %v3176_v11 }
 0xc5d   : > { %3010 = vmatprep.subr.bf16.mxu0 %v3296_v1 }
 0xc60   : > { %3011 = vmatpush3.bf16.msra.mxu0 %v3177_v12 }
 0xc61   : > { %3016 = vmatprep.subr.bf16.mxu0 %v3296_v1 }
 0xd2e   : > { %v1477_v47 = vpop.f32.mrb[28].mxu0 }
 0xd2f   : > { %v1478_v48 = vadd.f32 %v2748_v46, %v1477_v47  ;;  %v2994_v49 = vpop.f32.mrb[29].mxu0 }
 0xd30   : > { %v1480_v50 = vpop.f32.mrb[30].mxu0 }
 0xd31   : > { %v1483_v51 = vmul.f32 %v1478_v48, %v1478_v48  ;;  %v2995_v52 = vpop.f32.mrb[31].mxu0 }
 0xd33   : > { %v1484_v53 = vmul.f32 %v1483_v51, %v1478_v48 }
 0xd35   : > { %v1485_v54 = vmul.f32 0.044715, %v1484_v53 }
 0xd37   : > { %v1486_v55 = vadd.f32 %v1485_v54, %v1478_v48 }
 0xd39   : > { %v1487_v56 = vmul.f32 0.7978846, %v1486_v55 }
 0xd3b   : > { %3204 = vtanh.f32 %v1487_v56 }
 0xd45   : > { %v3205_v57 = vpop.eup %3204 }
 0xd46   : > { %v1489_v58 = vadd.f32 1.0, %v3205_v57 }
 0xd48   : > { %v1490_v59 = vmul.f32 0.5, %v1489_v58 }
 0xd4a   : > { %v1491_v60 = vmul.f32 %v1490_v59, %v1478_v48 }
 0xd4c   : > { %v1500_v61 = vpack.c.bf16 %v1491_v60, %v1491_v60 }
 0xd4e   : > { %3005 = vmatmul.mubr.msk.bf16.vlgmr.msra.gmra.mrb[28].mxu1 %vm1532_vm4, %v1500_v61 }
 0xd4f   : > { %3024 = vmatprep.mubr.msk.bf16.mxu1 %vm3297_vm1, %v3296_v1 }
 0xe21   : > { %v1570_v63 = vpop.f32.mrb[28].mxu1 }
 0xe22   : > { %v1571_v0 = vadd.f32 %v2752_v62, %v1570_v63  ;;  %v3006_v2 = vpop.f32.mrb[29].mxu1 }
 0xe23   : > { %v1573_v3 = vpop.f32.mrb[30].mxu1 }
 0xe24   : > { %v3007_v21 = vpop.f32.mrb[31].mxu1  ;;  %v1576_v4 = vadd.f32 %v1571_v0, %v1415_v40 }
 0xe26   : > { %v1579_v5 = vsel %vm699_vm3, %v1576_v4, 0.0 }
 0xe27   : > { %1580 = vadd.xlane.f32.xlu1 %v1579_v5 }
 0xeb4   : > { %v1581_v6 = vpop.xlane.xlu1 %1580 }
 0xeb5   : > { %v1582_v7 = vmul.f32 0.03125, %v1581_v6  ;;  %v2770_v6 = vld [vmem:[%s3911_s6 + $0x14] sm:$0xf] }
 0xeb7   : > { %v1583_v8 = vsub.f32 %v1576_v4, %v1582_v7  ;;  %v2769_v4 = vld [vmem:[%s3911_s6 + $0x10] sm:$0xf]  ;;  %v1906_v7 = vsel %vm630_vm0, %v2770_v6, 0 }
 0xeb8   : > { %v1952_v5 = vsel %vm630_vm0, %v2769_v4, 0 }
 0xeb9   : > { %v1584_v9 = vmul.f32 %v1583_v8, %v1583_v8 }
 0xebb   : > { %v1585_v10 = vsel %vm699_vm3, %v1584_v9, 0.0 }
 0xebc   : > { %1586 = vadd.xlane.f32.xlu1 %v1585_v10 }
 0xf49   : > { %v1587_v14 = vpop.xlane.xlu1 %1586 }
 0xf4a   : > { %v1588_v15 = vmul.f32 0.03125, %v1587_v14 }
 0xf4c   : > { %v1589_v16 = vadd.f32 1e-05, %v1588_v15 }
 0xf4e   : > { %3206 = vrsqrt.f32 %v1589_v16 }
 0xf58   : > { %v3207_v17 = vpop.eup %3206 }
 0xf59   : > { %v1591_v19 = vmul.f32 %v3207_v17, %v1583_v8 }
 0xf5b   : > { %v1598_v22 = vmul.f32 %v2758_v18, %v1591_v19 }
 0xf5d   : > { %v3673_v23 = vadd.f32 %v2759_v20, %v1598_v22 }
 0xf5f   : > { %v1611_v24 = vpack.c.bf16 %v3673_v23, %v3673_v23 }
 0xf61   : > { %3013 = vmatmul.mubr.msk.bf16.vlgmr.msra.gmra.mrb[32].mxu0 %vm699_vm3, %v1611_v24 }
 0xf62   : > { %3018 = vmatprep.mubr.msk.bf16.mxu0 %vm3297_vm1, %v3296_v1 }
0x1034   : > { %v1669_v26 = vpop.f32.mrb[32].mxu0 }
0x1035   : > { %v1670_v27 = vadd.f32 %v2765_v25, %v1669_v26  ;;  %v3014_v28 = vpop.f32.mrb[33].mxu0 }
0x1036   : > { %v1672_v29 = vpop.f32.mrb[34].mxu0 }
0x1037   : > { %v3683_v30 = vpack.c.bf16 %v1670_v27, %v1670_v27  ;;  %v3015_v31 = vpop.f32.mrb[35].mxu0 }
0x1039   : > { %1793 = vrot.lane.b32.xlu0 %v3683_v30, %s3300_s25  ;;  %1682 = vrot.lane.b32.xlu1 %v3683_v30, %s3299_s2  ;;  %s3954_s2 = smov 80  }
0x103d   : > { %1791 = vrot.lane.b32.xlu0 %v3683_v30, %s3298_s21  ;;  %s3953_s21 = smov 64  }
0x10ab   : > { %v1683_v13 = vpop.permute.xlu1 %1682  ;;  %v1794_v33 = vpop.permute.xlu0 %1793 }
0x10ac   : > { %v1688_v32 = vsel %vm626_vm2, %v1683_v13, 0  ;;  %v1799_v34 = vsel %vm626_vm2, %v1794_v33, 0 }
0x10ad   : > { %3017 = vmatpush3.bf16.xpose.msra.mxu0 %v1688_v32 }
0x10ae   : > { %3028 = vmatprep.subr.bf16.mxu0 %v3296_v1 }
0x10af   : > { %v1792_v35 = vpop.permute.xlu0 %1791 }
0x10b4   : > { %3019 = vmatmul.mubr.msk.bf16.vlgmr.msra.gmra.mrb[36].mxu0 %vm626_vm2, %v3683_v30 }
0x10b5   : > { %3029 = vmatpush3.bf16.xpose.msra.mxu0 %v1799_v34  ;;  %3030 = vmatprep.mubr.msk.bf16.mxu0 %vm3297_vm1, %v3296_v1 }
0x10b6   : > { %3040 = vmatprep.subr.bf16.mxu0 %v3296_v1 }
0x10bc   : > { %3031 = vmatmul.mubr.msk.bf16.vlgmr.msra.gmra.mrb[40].mxu0 %vm626_vm2, %v1792_v35 }
0x10bd   : > { %3042 = vmatprep.mubr.msk.bf16.mxu0 %vm3297_vm1, %v3296_v1  ;;  %3041 = vmatpush3.bf16.msra.mxu0 %v1906_v7 }
0x10be   : > { %3052 = vmatprep.subr.bf16.mxu0 %v3296_v1 }
0x1187   : > { %v1724_v36 = vpop.f32.mrb[36].mxu0 }
0x1188   : > { %v3020_v37 = vpop.f32.mrb[37].mxu0  ;;  %v1730_v38 = vsel %vm626_vm2, %v1724_v36, -inf }
0x1189   : > { %1731 = vmax.xlane.f32.xlu0 %v1730_v38  ;;  %v1727_v39 = vpop.f32.mrb[38].mxu0 }
0x118a   : > { %v3021_v40 = vpop.f32.mrb[39].mxu0 }
0x118f   : > { %v1835_v41 = vpop.f32.mrb[40].mxu0 }
0x1190   : > { %v3032_v42 = vpop.f32.mrb[41].mxu0  ;;  %v1841_v43 = vsel %vm626_vm2, %v1835_v41, -inf }
0x1191   : > { %1842 = vmax.xlane.f32.xlu1 %v1841_v43  ;;  %v1838_v44 = vpop.f32.mrb[42].mxu0 }
0x1192   : > { %v3033_v45 = vpop.f32.mrb[43].mxu0 }
0x11a2   : > { %1853 = vrot.lane.b32.xlu1 %v3683_v30, %s3302_s23  ;;  %s2824_s23 = sshll.u32 %s3431_s1, 4  ;;  %s3309_s1 = smov [#allocation2]  }
0x11a3   : > { %s3236_s0 = sshll.u32 %s3309_s1, 4  ;;  %s3237_s0 = int_to_ptr.vmem [resolvable:$false] %s3236_s0 }
0x11a4   : > { %s3238_s27 = scalar_lea.vmem %s3237_s0, 32 }
0x11a6   : > { %1994 = vrot.lane.b32.xlu1 %v3683_v30, %s3303_s22 }
0x1216   : > { %v1732_v46 = vpop.xlane.xlu0 %1731 }
0x1217   : > { %v1733_v47 = vsub.f32 %v1724_v36, %v1732_v46 }
0x1219   : > { %v1734_v48 = vmul.f32 1.442695, %v1733_v47 }
0x121b   : > { %3208 = vpow2.f32 %v1734_v48 }
0x121e   : > { %v1843_v49 = vpop.xlane.xlu1 %1842 }
0x121f   : > { %v1844_v50 = vsub.f32 %v1835_v41, %v1843_v49 }
0x1221   : > { %v1845_v51 = vmul.f32 1.442695, %v1844_v50 }
0x1222   : > { %v1854_v62 = vpop.permute.xlu1 %1853 }
0x1223   : > { %3210 = vpow2.f32 %v1845_v51  ;;  %v1859_v0 = vsel %vm630_vm0, %v1854_v62, 0 }
0x1225   : > { %v3209_v52 = vpop.eup %3208 }
0x1226   : > { %v1736_v53 = vsel %vm626_vm2, %v3209_v52, 0.0  ;;  %v1995_v22 = vpop.permute.xlu1 %1994 }
0x1227   : > { %1737 = vadd.xlane.f32.xlu0 %v1736_v53 }
0x122d   : > { %v3211_v54 = vpop.eup %3210 }
0x122e   : > { %v1847_v55 = vsel %vm626_vm2, %v3211_v54, 0.0 }
0x122f   : > { %1848 = vadd.xlane.f32.xlu0 %v1847_v55 }
0x1245   : > { %1742 = vrot.lane.b32.xlu0 %v3683_v30, %s3953_s21  ;;  %s604_s21 = sand.u32 1, %s3286_s30  }
0x1249   : > { %1996 = vrot.lane.b32.xlu0 %v3683_v30, %s3954_s2  ;;  %s605_s2 = scalar_lea.vmem [#allocation2], %s604_s21 }
0x124a   : > { %s2654_s25 = sshll.u32 %s605_s2, 4  ;;  %s3860_s25 = int_to_ptr.vmem [resolvable:$true] %s2654_s25 }
0x124b   : > { %p3239_p0 = scmp.lt.s32.totalorder %s3860_s25, %s3237_s0 }
0x12b4   : > { %v1738_v56 = vpop.xlane.xlu0 %1737 }
0x12b5   : > { %3212 = vrcp.f32 %v1738_v56 }
0x12bc   : > { %v1849_v57 = vpop.xlane.xlu0 %1848 }
0x12bd   : > { %3214 = vrcp.f32 %v1849_v57 }
0x12bf   : > { %v3213_v58 = vpop.eup %3212 }
0x12c0   : > { %v1740_v59 = vmul.f32 %v3213_v58, %v3209_v52  ;;  %v1743_v60 = vpop.permute.xlu0 %1742  ;;  %v2771_v52 = vld [vmem:[%s3911_s6 + $0x18] sm:$0xf] }
0x12c1   : > { %v1748_v61 = vsel %vm630_vm0, %v1743_v60, 0  ;;  %v2109_v53 = vsel %vm630_vm0, %v2771_v52, 0  ;;  %v3182_v52 = vld [vmem:[%s3915_s10 + $0x30] sm:$0xff]  }
0x12c2   : > { %3023 = vmatpush3.bf16.msra.mxu1 %v1748_v61  ;;  %v1741_v63 = vpack.c.bf16 %v1740_v59, %v1740_v59 }
0x12c3   : > { %3034 = vmatprep.subr.bf16.mxu1 %v3296_v1 }
0x12c4   : > { %v1997_v14 = vpop.permute.xlu0 %1996 }
0x12c5   : > { %3025 = vmatmul.mubr.msk.bf16.vlgmr.msra.gmra.mrb[32].mxu1 %vm626_vm2, %v1741_v63  ;;  %v2002_v19 = vsel %vm626_vm2, %v1997_v14, 0 }
0x12c6   : > { %3035 = vmatpush3.bf16.msra.mxu1 %v1859_v0  ;;  %3036 = vmatprep.mubr.msk.bf16.mxu1 %vm3297_vm1, %v3296_v1 }
0x12c7   : > { %v3215_v2 = vpop.eup %3214  ;;  %3046 = vmatprep.subr.bf16.mxu1 %v3296_v1 }
0x12c8   : > { %v1851_v3 = vmul.f32 %v3215_v2, %v3211_v54 }
0x12ca   : > { %v1852_v21 = vpack.c.bf16 %v1851_v3, %v1851_v3 }
0x12cd   : > { %3037 = vmatmul.mubr.msk.bf16.vlgmr.msra.gmra.mrb[36].mxu1 %vm626_vm2, %v1852_v21 }
0x12ce   : > { %3048 = vmatprep.mubr.msk.bf16.mxu1 %vm3297_vm1, %v3296_v1  ;;  %3047 = vmatpush3.bf16.msra.mxu1 %v1952_v5 }
0x12cf   : > { %3058 = vmatprep.subr.bf16.mxu1 %v3296_v1 }
0x1398   : > { %v1784_v8 = vpop.f32.mrb[32].mxu1 }
0x1399   : > { %v1790_v9 = vpack.c.bf16 %v1784_v8, %v1784_v8  ;;  %v3026_v10 = vpop.f32.mrb[33].mxu1 }
0x139a   : > { %v1787_v11 = vpop.f32.mrb[34].mxu1 }
0x139b   : > { %v3027_v12 = vpop.f32.mrb[35].mxu1  ;;  %3049 = vmatmul.mubr.msk.bf16.vlgmr.msra.gmra.mrb[40].mxu1 %vm626_vm2, %v1790_v9 }
0x139c   : > { %3060 = vmatprep.mubr.msk.bf16.mxu1 %vm3297_vm1, %v3296_v1 }
0x13a0   : > { %v1895_v15 = vpop.f32.mrb[36].mxu1 }
0x13a1   : > { %v1901_v16 = vpack.c.bf16 %v1895_v15, %v1895_v15  ;;  %v3038_v17 = vpop.f32.mrb[37].mxu1 }
0x13a2   : > { %v1898_v18 = vpop.f32.mrb[38].mxu1 }
0x13a3   : > { %v3039_v20 = vpop.f32.mrb[39].mxu1  ;;  %3043 = vmatmul.mubr.msk.bf16.vlgmr.msra.gmra.mrb[44].mxu0 %vm626_vm2, %v1901_v16 }
0x13a4   : > { %3053 = vmatpush3.bf16.xpose.msra.mxu0 %v2002_v19  ;;  %3054 = vmatprep.mubr.msk.bf16.mxu0 %vm3297_vm1, %v3296_v1 }
0x13a5   : > { %3064 = vmatprep.subr.bf16.mxu0 %v3296_v1 }
0x13ab   : > { %3055 = vmatmul.mubr.msk.bf16.vlgmr.msra.gmra.mrb[48].mxu0 %vm626_vm2, %v1995_v22 }
0x13ac   : > { %3066 = vmatprep.mubr.msk.bf16.mxu0 %vm3297_vm1, %v3296_v1  ;;  %3065 = vmatpush3.bf16.msra.mxu0 %v2109_v53  ;;  %v3183_v53 = vld [vmem:[%s3915_s10 + $0x38] sm:$0xff]  }
0x13ad   : > { %3076 = vmatprep.subr.bf16.mxu0 %v3296_v1 }
0x146e   : > { %v1988_v24 = vpop.f32.mrb[40].mxu1 }
0x146f   : > { %v3050_v25 = vpop.f32.mrb[41].mxu1 }
0x1470   : > { %v1991_v26 = vpop.f32.mrb[42].mxu1 }
0x1471   : > { %v3051_v27 = vpop.f32.mrb[43].mxu1 }
0x1476   : > { %v1942_v28 = vpop.f32.mrb[44].mxu0 }
0x1477   : > { %v3745_v29 = vadd.f32 %v1988_v24, %v1942_v28  ;;  %v3044_v31 = vpop.f32.mrb[45].mxu0 }
0x1478   : > { %v1945_v13 = vpop.f32.mrb[46].mxu0 }
0x1479   : > { %v3045_v32 = vpop.f32.mrb[47].mxu0 }
0x147e   : > { %v2038_v33 = vpop.f32.mrb[48].mxu0 }
0x147f   : > { %v3056_v34 = vpop.f32.mrb[49].mxu0  ;;  %v2044_v35 = vsel %vm626_vm2, %v2038_v33, -inf }
0x1480   : > { %2045 = vmax.xlane.f32.xlu0 %v2044_v35  ;;  %v2041_v36 = vpop.f32.mrb[50].mxu0 }
0x1481   : > { %v3057_v37 = vpop.f32.mrb[51].mxu0 }
0x1496   : > { %2056 = vrot.lane.b32.xlu0 %v3683_v30, %s3955_s24  ;;  %s3865_s24 = scalar_lea.hbm %s3924_s19, %s2824_s23 }
0x149a   : > { %2152 = vrot.lane.b32.xlu0 %v3683_v30, %s3956_s26  ;;  %s2642_s26 = scalar_lea.sflag [#allocation3], %s604_s21 }
0x150d   : > { %v2046_v38 = vpop.xlane.xlu0 %2045 }
0x150e   : > { %v2047_v39 = vsub.f32 %v2038_v33, %v2046_v38 }
0x1510   : > { %v2048_v40 = vmul.f32 1.442695, %v2047_v39  ;;  %v3178_v39 = vld [vmem:[%s3913_s8 + $0x10] sm:$0xff]  }
0x1511   : > { %v2057_v41 = vpop.permute.xlu0 %2056 }
0x1512   : > { %3216 = vpow2.f32 %v2048_v40  ;;  %v2062_v42 = vsel %vm630_vm0, %v2057_v41, 0 }
0x1513   : > { %3059 = vmatpush3.bf16.msra.mxu1 %v2062_v42 }
0x1514   : > { %3070 = vmatprep.subr.bf16.mxu1 %v3296_v1 }
0x1515   : > { %v2153_v51 = vpop.permute.xlu0 %2152 }
0x151c   : > { %v3217_v43 = vpop.eup %3216 }
0x151d   : > { %v2050_v44 = vsel %vm626_vm2, %v3217_v43, 0.0 }
0x151e   : > { %2051 = vadd.xlane.f32.xlu1 %v2050_v44  ;;  %v2789_v44 = vld [vmem:[%s3917_s12 + $0x1] ss:$0 sm:$0xff] }
0x152f   : > { %2154 = vrot.lane.b32.xlu1 %v3683_v30, %s3957_s28  ;;  %s3232_s28 = scalar_lea.vmem %s3860_s25, 16 }
0x1530   : > { %p3233_p11 = scmp.ne.s32.totalorder %s3860_s25, %s3232_s28  ;;  %p3240_p1 = scmp.lt.s32.totalorder %s3238_s27, %s3232_s28 }
0x1532   : > { %p3234_p12 = pnand %p3233_p11, %p3448_p5  ;;  %p3241_p2 = por %p3240_p1, %p3239_p0 }
0x1534   : > { %p3235_p13 = pneg %p3234_p12 }
0x1536   : > { %p3242_p3 = pnand %p3241_p2, %p3235_p13 }
0x15ab   : > { %v2052_v45 = vpop.xlane.xlu1 %2051 }
0x15ac   : > { %3218 = vrcp.f32 %v2052_v45 }
0x15af   : > { %v2155_v48 = vpop.permute.xlu1 %2154 }
0x15b0   : > { %v2160_v50 = vsel %vm626_vm2, %v2155_v48, 0 }
0x15b6   : > { %v3219_v46 = vpop.eup %3218 }
0x15b7   : > { %v2054_v47 = vmul.f32 %v3219_v46, %v3217_v43  ;;  %v2790_v46 = vld [vmem:[%s3918_s13 + $0x1] ss:$0 sm:$0xff] }
0x15b9   : > { %v2055_v49 = vpack.c.bf16 %v2054_v47, %v2054_v47 }
0x15bb   : > { %3061 = vmatmul.mubr.msk.bf16.vlgmr.msra.gmra.mrb[44].mxu1 %vm626_vm2, %v2055_v49 }
0x15bc   : > { %3071 = vmatpush3.bf16.xpose.msra.mxu1 %v2160_v50  ;;  %3072 = vmatprep.mubr.msk.bf16.mxu1 %vm3297_vm1, %v3296_v1  ;;  %v3180_v50 = vld [vmem:[%s3915_s10 + $0x20] sm:$0xff]  }
0x15bd   : > { %3082 = vmatprep.subr.bf16.mxu1 %v3296_v1 }
0x15c3   : > { %3073 = vmatmul.mubr.msk.bf16.vlgmr.msra.gmra.mrb[48].mxu1 %vm626_vm2, %v2153_v51  ;;  %v3181_v51 = vld [vmem:[%s3915_s10 + $0x28] sm:$0xff]  }
0x15c4   : > { %3084 = vmatprep.mubr.msk.bf16.mxu1 %vm3297_vm1, %v3296_v1 }
0x168e   : > { %v2098_v54 = vpop.f32.mrb[44].mxu1 }
0x168f   : > { %v2104_v55 = vpack.c.bf16 %v2098_v54, %v2098_v54  ;;  %v3062_v56 = vpop.f32.mrb[45].mxu1  ;;  %v2796_v54 = vld [vmem:[%s3914_s9 + $0x1] ss:$0 sm:$0xff] }
0x1690   : > { %v2101_v57 = vpop.f32.mrb[46].mxu1 }
0x1691   : > { %v3063_v58 = vpop.f32.mrb[47].mxu1  ;;  %3067 = vmatmul.mubr.msk.bf16.vlgmr.msra.gmra.mrb[52].mxu0 %vm626_vm2, %v2104_v55 }
0x1692   : > { %3078 = vmatprep.mubr.msk.bf16.mxu0 %vm3297_vm1, %v3296_v1 }
0x1696   : > { %v2196_v59 = vpop.f32.mrb[48].mxu1 }
0x1697   : > { %v3074_v60 = vpop.f32.mrb[49].mxu1  ;;  %v2202_v61 = vsel %vm626_vm2, %v2196_v59, -inf }
0x1698   : > { %2203 = vmax.xlane.f32.xlu1 %v2202_v61  ;;  %v2199_v62 = vpop.f32.mrb[50].mxu1 }
0x1699   : > { %v3075_v63 = vpop.f32.mrb[51].mxu1 }
0x1725   : > { %v2204_v0 = vpop.xlane.xlu1 %2203 }
0x1726   : > { %v2205_v2 = vsub.f32 %v2196_v59, %v2204_v0 }
0x1728   : > { %v2206_v3 = vmul.f32 1.442695, %v2205_v2 }
0x172a   : > { %3220 = vpow2.f32 %v2206_v3 }
0x1734   : > { %v3221_v21 = vpop.eup %3220 }
0x1735   : > { %v2208_v4 = vsel %vm626_vm2, %v3221_v21, 0.0 }
0x1736   : > { %2209 = vadd.xlane.f32.xlu0 %v2208_v4 }
0x174c   : > { %2214 = vrot.lane.b32.xlu0 %v3683_v30, %s3958_s29  ;;  %v2772_v30 = vld [vmem:[%s3911_s6 + $0x1c] sm:$0xf] }
0x174d   : > { %v2267_v17 = vsel %vm630_vm0, %v2772_v30, 0 }
0x174e   : > { %3083 = vmatpush3.bf16.msra.mxu1 %v2267_v17 }
0x174f   : > { %3096 = vmatprep.subr.bf16.mxu1 %v3296_v1 }
0x1764   : > { %v2145_v5 = vpop.f32.mrb[52].mxu0 }
0x1765   : > { %v2151_v6 = vadd.f32 %v2145_v5, %v3745_v29  ;;  %v3068_v7 = vpop.f32.mrb[53].mxu0  ;;  %v2786_v29 = vld [vmem:[%s3912_s7 + $0x1] ss:$0 sm:$0xff] }
0x1766   : > { %v2148_v8 = vpop.f32.mrb[54].mxu0 }
0x1767   : > { %v3069_v9 = vpop.f32.mrb[55].mxu0 }
0x17c3   : > { %v2210_v10 = vpop.xlane.xlu0 %2209 }
0x17c4   : > { %3222 = vrcp.f32 %v2210_v10 }
0x17c7   : > { %v2215_v11 = vpop.permute.xlu0 %2214 }
0x17c8   : > { %v2220_v12 = vsel %vm630_vm0, %v2215_v11, 0 }
0x17c9   : > { %3077 = vmatpush3.bf16.msra.mxu0 %v2220_v12 }
0x17ca   : > { %3088 = vmatprep.subr.bf16.mxu0 %v3296_v1 }
0x17ce   : > { %v3223_v14 = vpop.eup %3222 }
0x17cf   : > { %v2212_v15 = vmul.f32 %v3223_v14, %v3221_v21 }
0x17d1   : > { %v2213_v16 = vpack.c.bf16 %v2212_v15, %v2212_v15 }
0x17d3   : > { %3079 = vmatmul.mubr.msk.bf16.vlgmr.msra.gmra.mrb[56].mxu0 %vm626_vm2, %v2213_v16 }
0x17d4   : > { %3092 = vmatprep.mubr.msk.bf16.mxu0 %vm3297_vm1, %v3296_v1  ;;  %3089 = vmatpush3.bf16.msra.mxu0 %v3178_v39 }
0x17d5   : > { %3090 = vmatprep.subr.bf16.mxu0 %v3296_v1 }
0x18a6   : > { %v2256_v18 = vpop.f32.mrb[56].mxu0 }
0x18a7   : > { %v2262_v19 = vpack.c.bf16 %v2256_v18, %v2256_v18  ;;  %v3080_v20 = vpop.f32.mrb[57].mxu0 }
0x18a8   : > { %v2259_v22 = vpop.f32.mrb[58].mxu0 }
0x18a9   : > { %v3081_v24 = vpop.f32.mrb[59].mxu0  ;;  %3085 = vmatmul.mubr.msk.bf16.vlgmr.msra.gmra.mrb[52].mxu1 %vm626_vm2, %v2262_v19 }
0x18aa   : > { %3104 = vmatprep.mubr.msk.bf16.mxu1 %vm3297_vm1, %v3296_v1  ;;  %3097 = vmatpush3.bf16.msra.mxu1 %v3180_v50 }
0x18ab   : > { %3098 = vmatprep.subr.bf16.mxu1 %v3296_v1 }
0x18ae   : > { %3099 = vmatpush3.bf16.msra.mxu1 %v3181_v51 }
0x18af   : > { %3100 = vmatprep.subr.bf16.mxu1 %v3296_v1 }
0x18b2   : > { %3101 = vmatpush3.bf16.msra.mxu1 %v3182_v52 }
0x18b3   : > { %3102 = vmatprep.subr.bf16.mxu1 %v3296_v1 }
0x18b6   : > { %3103 = vmatpush3.bf16.msra.mxu1 %v3183_v53 }
0x197c   : > { %v2303_v25 = vpop.f32.mrb[52].mxu1 }
0x197d   : > { %v2309_v26 = vadd.f32 %v2303_v25, %v2151_v6  ;;  %v3086_v27 = vpop.f32.mrb[53].mxu1  ;;  %v2809_v6 = vld [vmem:[%s3916_s11 + $0x1] ss:$0 sm:$0xff] }
0x197e   : > { %v2306_v28 = vpop.f32.mrb[54].mxu1  ;;  %v2817_v25 = vld [vmem:[%s3919_s14 + $0x1] ss:$0 sm:$0xff] }
0x197f   : > { %v2310_v31 = vadd.f32 %v2309_v26, %v3673_v23  ;;  %v3087_v13 = vpop.f32.mrb[55].mxu1  ;;  %v3179_v23 = vld [vmem:[%s3913_s8 + $0x18] sm:$0xff]   ;;  %v2818_v27 = vld [vmem:[%s3920_s15 + $0x1] ss:$0 sm:$0xff] }
0x1980   : > { %3091 = vmatpush3.bf16.msra.mxu0 %v3179_v23 }
0x1981   : > { %v2319_v32 = vadd.f32 %v2786_v29, %v2310_v31  ;;  %3108 = vmatprep.subr.bf16.mxu0 %v3296_v1 }
0x1983   : > { %v2324_v33 = vsel %vm699_vm3, %v2319_v32, 0.0 }
0x1984   : > { %2325 = vadd.xlane.f32.xlu1 %v2324_v33 }
0x1a11   : > { %v2326_v34 = vpop.xlane.xlu1 %2325 }
0x1a12   : > { %v2327_v35 = vmul.f32 0.03125, %v2326_v34 }
0x1a14   : > { %v2328_v36 = vsub.f32 %v2319_v32, %v2327_v35 }
0x1a16   : > { %v2329_v37 = vmul.f32 %v2328_v36, %v2328_v36 }
0x1a18   : > { %v2330_v38 = vsel %vm699_vm3, %v2329_v37, 0.0  ;;  %v3185_v37 = vld [vmem:[%s3923_s18 + $0x8] sm:$0xff]  }
0x1a19   : > { %2331 = vadd.xlane.f32.xlu1 %v2330_v38 }
0x1aa6   : > { %v2332_v40 = vpop.xlane.xlu1 %2331 }
0x1aa7   : > { %v2333_v41 = vmul.f32 0.03125, %v2332_v40 }
0x1aa9   : > { %v2334_v42 = vadd.f32 1e-05, %v2333_v41  ;;  %v2819_v41 = vld [vmem:[%s3921_s16] ss:$0 sm:$0xff] }
0x1aab   : > { %3224 = vrsqrt.f32 %v2334_v42 }
0x1ab5   : > { %v3225_v43 = vpop.eup %3224 }
0x1ab6   : > { %v2336_v45 = vmul.f32 %v3225_v43, %v2328_v36  ;;  %v3184_v36 = vld [vmem:[%s3923_s18] sm:$0xff]  }
0x1ab7   : > { %v2820_v43 = vld [vmem:[%s3922_s17] ss:$0 sm:$0xff] }
0x1ab8   : > { %v2343_v47 = vmul.f32 %v2789_v44, %v2336_v45 }
0x1aba   : > { %v2350_v48 = vadd.f32 %v2790_v46, %v2343_v47 }
0x1abc   : > { %v2356_v49 = vpack.c.bf16 %v2350_v48, %v2350_v48 }
0x1abe   : > { %3093 = vmatmul.mubr.msk.bf16.vlgmr.msra.gmra.mrb[60].mxu0 %vm699_vm3, %v2356_v49 }
0x1abf   : > { %3112 = vmatprep.mubr.msk.bf16.mxu0 %vm3297_vm1, %v3296_v1  ;;  %3109 = vmatpush3.bf16.msra.mxu0 %v3184_v36 }
0x1ac0   : > { %3110 = vmatprep.subr.bf16.mxu0 %v3296_v1 }
0x1ac3   : > { %3111 = vmatpush3.bf16.msra.mxu0 %v3185_v37 }
0x1b91   : > { %v2414_v55 = vpop.f32.mrb[60].mxu0 }
0x1b92   : > { %v2415_v56 = vadd.f32 %v2796_v54, %v2414_v55  ;;  %v3094_v57 = vpop.f32.mrb[61].mxu0 }
0x1b93   : > { %v2417_v58 = vpop.f32.mrb[62].mxu0 }
0x1b94   : > { %v2420_v59 = vmul.f32 %v2415_v56, %v2415_v56  ;;  %v3095_v60 = vpop.f32.mrb[63].mxu0 }
0x1b96   : > { %v2421_v61 = vmul.f32 %v2420_v59, %v2415_v56 }
0x1b98   : > { %v2422_v62 = vmul.f32 0.044715, %v2421_v61 }
0x1b9a   : > { %v2423_v63 = vadd.f32 %v2422_v62, %v2415_v56 }
0x1b9c   : > { %v2424_v0 = vmul.f32 0.7978846, %v2423_v63 }
0x1b9e   : > { %3226 = vtanh.f32 %v2424_v0 }
0x1ba8   : > { %v3227_v2 = vpop.eup %3226 }
0x1ba9   : > { %v2426_v3 = vadd.f32 1.0, %v3227_v2 }
0x1bab   : > { %v2427_v21 = vmul.f32 0.5, %v2426_v3 }
0x1bad   : > { %v2428_v4 = vmul.f32 %v2427_v21, %v2415_v56 }
0x1baf   : > { %v2438_v5 = vpack.c.bf16 %v2428_v4, %v2428_v4 }
0x1bb1   : > { %3105 = vmatmul.mubr.msk.bf16.vlgmr.msra.gmra.mrb[56].mxu1 %vm1532_vm4, %v2438_v5 }
0x1c84   : > { %v2508_v7 = vpop.f32.mrb[56].mxu1 }
0x1c85   : > { %v2509_v8 = vadd.f32 %v2809_v6, %v2508_v7  ;;  %v3106_v9 = vpop.f32.mrb[57].mxu1 }
0x1c86   : > { %v2511_v10 = vpop.f32.mrb[58].mxu1 }
0x1c87   : > { %v3107_v11 = vpop.f32.mrb[59].mxu1  ;;  %v2514_v12 = vadd.f32 %v2509_v8, %v2350_v48 }
0x1c89   : > { %v2519_v14 = vsel %vm699_vm3, %v2514_v12, 0.0 }
0x1c8a   : > { %2520 = vadd.xlane.f32.xlu1 %v2519_v14 }
0x1d17   : > { %v2521_v15 = vpop.xlane.xlu1 %2520 }
0x1d18   : > { %v2522_v16 = vmul.f32 0.03125, %v2521_v15 }
0x1d1a   : > { %v2523_v30 = vsub.f32 %v2514_v12, %v2522_v16 }
0x1d1c   : > { %v2524_v17 = vmul.f32 %v2523_v30, %v2523_v30 }
0x1d1e   : > { %v2525_v18 = vsel %vm699_vm3, %v2524_v17, 0.0 }
0x1d1f   : > { %2526 = vadd.xlane.f32.xlu1 %v2525_v18 }
0x1dac   : > { %v2527_v19 = vpop.xlane.xlu1 %2526 }
0x1dad   : > { %v2528_v20 = vmul.f32 0.03125, %v2527_v19 }
0x1daf   : > { %v2529_v22 = vadd.f32 1e-05, %v2528_v20 }
0x1db1   : > { %3228 = vrsqrt.f32 %v2529_v22 }
0x1dbb   : > { %v3229_v24 = vpop.eup %3228 }
0x1dbc   : > { %v2531_v26 = vmul.f32 %v3229_v24, %v2523_v30 }
0x1dbe   : > { %v2538_v28 = vmul.f32 %v2817_v25, %v2531_v26 }
0x1dc0   : > { %v2545_v29 = vadd.f32 %v2818_v27, %v2538_v28 }
0x1dc2   : > { %v2549_v31 = vsel %vm2548_vm5, %v2545_v29, 0.0 }
0x1dc3   : > { %2550 = vadd.xlane.f32.xlu1 %v2549_v31 }
0x1e50   : > { %v2551_v13 = vpop.xlane.xlu1 %2550 }
0x1e51   : > { %v2552_v32 = vmul.f32 0.03125, %v2551_v13 }
0x1e53   : > { %v2553_v33 = vsub.f32 %v2545_v29, %v2552_v32 }
0x1e55   : > { %v2554_v34 = vmul.f32 %v2553_v33, %v2553_v33 }
0x1e57   : > { %v2555_v35 = vsel %vm2548_vm5, %v2554_v34, 0.0 }
0x1e58   : > { %2556 = vadd.xlane.f32.xlu1 %v2555_v35 }
0x1ee5   : > { %v2557_v38 = vpop.xlane.xlu1 %2556 }
0x1ee6   : > { %v2558_v39 = vmul.f32 0.03125, %v2557_v38 }
0x1ee8   : > { %v2559_v23 = vadd.f32 1e-05, %v2558_v39 }
0x1eea   : > { %3230 = vrsqrt.f32 %v2559_v23 }
0x1ef4   : > { %v3231_v40 = vpop.eup %3230 }
0x1ef5   : > { %v2561_v42 = vmul.f32 %v3231_v40, %v2553_v33 }
0x1ef7   : > { %v2568_v44 = vmul.f32 %v2819_v41, %v2561_v42 }
0x1ef9   : > { %v2575_v45 = vadd.f32 %v2820_v43, %v2568_v44 }
0x1efb   : > { %v2580_v1 = vpack.c.bf16 %v2575_v45, %v2575_v45 }
0x1efd   : > { %v2582_v46 = vshrl.u32 %v2580_v1, 16 }
0x1eff   : > { %v2584_v47 = vrot.slane %v2582_v46, 3 }
0x1f01   : > { %3113 = vmatmul.mubr.msk.bf16.vlgmr.msra.gmra.mrb[64].mxu0 %vm699_vm3, %v2584_v47 }
0x1fd4   : > { %v2634_v48 = vpop.f32.mrb[64].mxu0 }
0x1fd5   : > { %2640 = vst [vmem:[%s605_s2] sm:$0x1] %v2634_v48  ;;  %v3114_v49 = vpop.f32.mrb[65].mxu0 }
0x1fd6   : > { %v2637_v50 = vpop.f32.mrb[66].mxu0 }
0x1fd7   : > { %3245 = shalt.err (!%p3242_p3)
}
0x1fd8   : > { %s3246_s29 = scalar_lea.hbm %s3865_s24, 16  ;;  %s3250_s23 = scalar_lea.hbm %s3924_s19, 32 }
0x1fd9   : > { %p3247_p4 = scmp.ne.s32.totalorder %s3865_s24, %s3246_s29  ;;  %p3251_p9 = scmp.lt.u32.totalorder %s3865_s24, %s3924_s19 }
0x1fda   : > { %p3252_p10 = scmp.lt.u32.totalorder %s3250_s23, %s3246_s29  ;;  %p3254_p12 = scmp.lt.u32.totalorder %s3246_s29, %s3865_s24 }
0x1fdb   : > { %p3248_p7 = pnand %p3247_p4, %p3448_p5 }
0x1fdc   : > { %p3253_p11 = por %p3252_p10, %p3251_p9 }
0x1fdd   : > { %p3249_p8 = pneg %p3248_p7 }
0x1fde   : > { %p3255_p13 = por %p3254_p12, %p3253_p11 }
0x1fe0   : > { %p3256_p0 = pnand %p3255_p13, %p3249_p8 }
0x1fe2   : > { %3259 = shalt.err (!%p3256_p0)
}
0x1fe3   : > { %3116 = dma.vmem_to_hbm [thread:$0]  (%p3448_p5), %s3860_s25, 16, %s3865_s24, %s2642_s26   ;;  %v3115_v51 = vpop.f32.mrb[67].mxu0 }
0x1fe4 PF: > { %s3959_s28 = sld [smem:[#allocation7_spill]]  ;;  %s3960_s1 = sld [smem:[#allocation5_spill]] }
0x1fea   : > { %p3122_p1 = scmp.ge.s32.totalorder %s3959_s28, 2  ;;  %s2666_s27 = sand.u32 1, %s3960_s1  }
0x1feb   : > { %s2667_s21 = scalar_lea.sflag [#allocation3], %s2666_s27 }
0x1fec   : > { %p3119_p2 = pnand %p3122_p1, %p3452_p6 }
0x1fee   : > { %3277 = dma.done.wait (!%p3119_p2), %s2667_s21, 16  }
0x1fef   : > { %3279 = vsyncadd (!%p3119_p2), %s2667_s21, 4294967280  ;;  %s3962_s21 = sld [smem:[#allocation8_spill]]  ;;  %s3963_s29 = sld [smem:[#allocation6_spill]] }
0x1ff0   : > { %s3964_s20 = sld [smem:[#allocation9_spill]]  ;;  %s3965_s0 = smov %s3286_s30 }
0x1ff5   : > { %p29_p3 = scmp.ge.s32.totalorder %s3962_s21, 4   ;;  %s3966_s30 = smov %s3963_s29 }
0x1ff7   :  { %31 = sbr.rel (!%p29_p3) target bundleno = 8 (0x8), region = 146 }
0x1ffe   :  { %2671 = vsyncpa [#allocation3], 1 }
0x1fff   :  { %2673 = vsyncpa [#allocation3 + $0x1], 1 }

</bundles_post_ra>
